<compile_context>
chip_gen: v5e
topology: v5e:2x2
jax: 0.10.0
libtpu: 0.0.40
codegen_flags: <defaults>
</compile_context>

<pallas_src>
import jax
import jax.numpy as jnp
from jax import lax
from jax.experimental import pallas as pl
from jax.experimental.pallas import tpu as pltpu


def _round_up(x, m):
    return (x + m - 1) // m * m


def _sympnet_kernel(a_ref,       # SMEM (4*L,) f32: [a_r, a_i, b_r, b_i] per layer
                    w1_ref,      # VMEM (L, N_pad, 2*M_pad) bf16: [Wr.T | Wi.T]
                    w2_ref,      # VMEM (L, M_pad, 2*N_pad) bf16: [Wr   | Wi  ]
                    bdiff_ref,   # VMEM (L, 1, M_pad) f32: lin_br - lin_bi
                    bsum_ref,    # VMEM (L, 1, M_pad) f32: lin_br + lin_bi
                    d_ref,       # VMEM (L, 1, M_pad) f32: diag
                    bias_ref,    # VMEM (L, 1, N_pad) f32
                    s0_ref,      # VMEM (4, TB, N_pad) f32: planes p_r, p_i, q_r, q_i
                    out_ref,     # VMEM (4, TB, N_pad) f32: accumulated planes
                    x_scr,       # VMEM (2*TB, N_pad) bf16  stage-1 LHS scratch
                    z_scr):      # VMEM (2*TB, M_pad) bf16  stage-2 LHS scratch
    bf16 = jnp.bfloat16
    L = w1_ref.shape[0]
    TB = s0_ref.shape[1]
    N_pad = s0_ref.shape[2]
    M_pad = w2_ref.shape[1]

    p_r0 = s0_ref[0]
    p_i0 = s0_ref[1]
    q_r0 = s0_ref[2]
    q_i0 = s0_ref[3]

    # Accumulators live in out_ref (not the loop carry) -> 4-plane carry.
    out_ref[0] = p_r0
    out_ref[1] = p_i0
    out_ref[2] = q_r0
    out_ref[3] = q_i0

    def layer(l, carry):
        p_r, p_i, q_r, q_i = carry

        a_r = a_ref[4 * l + 0]
        a_i = a_ref[4 * l + 1]
        b_r = a_ref[4 * l + 2]
        b_i = a_ref[4 * l + 3]

        # complex rotation of the state into the layer input
        real = a_r * q_r - a_i * q_i + (b_r * p_r - b_i * p_i)
        imag = a_r * q_i + a_i * q_r + (b_r * p_i + b_i * p_r)

        # ---- stage 1: one MXU pass of [real; imag] against [Wr.T | Wi.T] ----
        x_scr[0:TB, :] = real.astype(bf16)
        x_scr[TB:, :] = imag.astype(bf16)
        y = jnp.dot(x_scr[...], w1_ref[l],
                    preferred_element_type=jnp.float32)      # (2TB, 2*M_pad)

        bdiff = bdiff_ref[l]                                  # (1, M_pad) = br - bi
        bsum = bsum_ref[l]                                    # (1, M_pad) = br + bi
        # TODO(synk): only the module-default 'tanh' activation is wired in.
        # (A bf16 tanh would double EUP throughput on v6e/v7x if the EUP is
        # the binding slot; kept in f32 for accuracy parity with the module.)
        r1 = jnp.tanh(y[:TB, :M_pad] - y[TB:, M_pad:] + bdiff)
        i1 = jnp.tanh(y[TB:, :M_pad] + y[:TB, M_pad:] + bsum)

        # ---- stage 2: one MXU pass against [Wr | Wi]; diag folded into LHS ----
        d = d_ref[l]                                          # (1, M_pad)
        z_scr[0:TB, :] = (r1 * d).astype(bf16)
        z_scr[TB:, :] = (i1 * d).astype(bf16)
        u = jnp.dot(z_scr[...], w2_ref[l],
                    preferred_element_type=jnp.float32)       # (2TB, 2*N_pad)

        real2 = u[:TB, :N_pad] - u[TB:, N_pad:]
        imag2 = u[TB:, :N_pad] + u[:TB, N_pad:] + bias_ref[l]

        # symplectic state update
        q_r = q_r + (b_r * real2 - b_i * imag2)
        q_i = q_i + (b_r * imag2 + b_i * real2)
        p_r = p_r - (a_r * real2 - a_i * imag2)
        p_i = p_i - (a_r * imag2 + a_i * real2)

        # running complex accumulation: p += p_l, q += q_l
        out_ref[0] += p_r
        out_ref[1] += p_i
        out_ref[2] += q_r
        out_ref[3] += q_i

        return (p_r, p_i, q_r, q_i)

    # Cap unrolling: full unroll only for shallow nets (code-size / spills).
    lax.fori_loop(0, L, layer, (p_r0, p_i0, q_r0, q_i0),
                  unroll=L if L <= 8 else 2)


def complex_sympnet_forward(p, q, params):
    """Pallas forward. p, q: (B, N) complex64. Returns (p_out, q_out)."""
    B, N = p.shape
    L, M, _ = params["Wr"].shape
    f32 = jnp.float32
    bf16 = jnp.bfloat16

    N_pad = _round_up(N, 128)
    M_pad = _round_up(M, 128)
    B8 = _round_up(B, 8)
    # Batch tile: <=128 rows (4-plane f32 carry stays near the 64-vreg file)
    # and >=2 tiles whenever the batch allows it so both v7x TensorCores get
    # work via dimension_semantics=("parallel",).
    TB = min(128, max(8, _round_up(pl.cdiv(B8, 2), 8)))
    B_pad = _round_up(B8, TB)
    n_bt = B_pad // TB

    # ---- pack state planes [p_r, p_i, q_r, q_i] into one lane-dense slab ----
    planes = jnp.stack([jnp.real(p), jnp.imag(p),
                        jnp.real(q), jnp.imag(q)], axis=0).astype(f32)
    state0 = jnp.pad(planes, ((0, 0), (0, B_pad - B), (0, N_pad - N)))

    # ---- weights: output-concatenated bf16 slabs (one MXU pass per stage) ----
    Wr = params["Wr"].astype(f32)                              # (L, M, N)
    Wi = params["Wi"].astype(f32)

    def pad2(w, rows, cols):
        return jnp.pad(w, ((0, 0), (0, rows - w.shape[1]), (0, cols - w.shape[2])))

    w1 = jnp.concatenate([pad2(jnp.swapaxes(Wr, 1, 2), N_pad, M_pad),
                          pad2(jnp.swapaxes(Wi, 1, 2), N_pad, M_pad)],
                         axis=2).astype(bf16)                  # (L, N_pad, 2*M_pad)
    w2 = jnp.concatenate([pad2(Wr, M_pad, N_pad),
                          pad2(Wi, M_pad, N_pad)],
                         axis=2).astype(bf16)                  # (L, M_pad, 2*N_pad)

    def pad_vec(v, tgt):           # (L, K) -> (L, 1, K_pad) f32
        return jnp.pad(v.astype(f32), ((0, 0), (0, tgt - v.shape[1])))[:, None, :]

    br = params["lin_br"].astype(f32)
    bi = params["lin_bi"].astype(f32)
    bdiff = pad_vec(br - bi, M_pad)        # precomputed on host (perf review)
    bsum = pad_vec(br + bi, M_pad)
    dg = pad_vec(params["diag"], M_pad)
    bs = pad_vec(params["bias"], N_pad)
    a_flat = params["a"].astype(f32).reshape(4 * L)   # 1D SMEM table (no 2D pad)

    # ---- explicit VMEM budget: 1x weights/vectors, 2x state in/out, scratch ----
    w_bytes = (w1.size + w2.size) * 2
    vec_bytes = (bdiff.size + bsum.size + dg.size + bs.size) * 4
    state_bytes = 2 * 2 * 4 * TB * N_pad * 4
    scratch_bytes = 2 * TB * (M_pad + N_pad) * 2
    vmem_limit = int(min(100 * 1024 * 1024,
                         max(16 * 1024 * 1024,
                             w_bytes + vec_bytes + state_bytes + scratch_bytes
                             + (4 << 20))))

    one_buf = pl.Buffered(buffer_count=1)   # grid-invariant: no 2nd pipeline buffer
    full3 = lambda b: (0, 0, 0)

    grid_spec = pltpu.PrefetchScalarGridSpec(
        num_scalar_prefetch=0,
        grid=(n_bt,),
        in_specs=[
            pl.BlockSpec(memory_space=pltpu.MemorySpace.SMEM),          # a (4L,)
            pl.BlockSpec((L, N_pad, 2 * M_pad), full3,
                         pipeline_mode=one_buf),                        # W1
            pl.BlockSpec((L, M_pad, 2 * N_pad), full3,
                         pipeline_mode=one_buf),                        # W2
            pl.BlockSpec((L, 1, M_pad), full3, pipeline_mode=one_buf),  # br - bi
            pl.BlockSpec((L, 1, M_pad), full3, pipeline_mode=one_buf),  # br + bi
            pl.BlockSpec((L, 1, M_pad), full3, pipeline_mode=one_buf),  # diag
            pl.BlockSpec((L, 1, N_pad), full3, pipeline_mode=one_buf),  # bias
            pl.BlockSpec((4, TB, N_pad), lambda b: (0, b, 0)),          # state0
        ],
        out_specs=pl.BlockSpec((4, TB, N_pad), lambda b: (0, b, 0)),
        scratch_shapes=[pltpu.VMEM((2 * TB, N_pad), bf16),   # stage-1 LHS
                        pltpu.VMEM((2 * TB, M_pad), bf16)],  # stage-2 LHS
    )

    out = pl.pallas_call(
        _sympnet_kernel,
        out_shape=jax.ShapeDtypeStruct((4, B_pad, N_pad), f32),
        grid_spec=grid_spec,
        compiler_params=pltpu.CompilerParams(
            dimension_semantics=("parallel",),
            vmem_limit_bytes=vmem_limit),
    )(a_flat, w1, w2, bdiff, bsum, dg, bs, state0)

    pr = out[0, :B, :N]
    pi = out[1, :B, :N]
    qr = out[2, :B, :N]
    qi = out[3, :B, :N]
    return (pr + 1j * pi).astype(p.dtype), (qr + 1j * qi).astype(q.dtype)


def reference_forward(p, q, params):
    """Pure-JAX f32 mirror of the PyTorch forward (correctness check)."""
    q_r, q_i = jnp.real(q), jnp.imag(q)
    p_r, p_i = jnp.real(p), jnp.imag(p)
    L = params["a"].shape[0]
    for l in range(L):
        a_r, a_i, b_r, b_i = [params["a"][l, j] for j in range(4)]
        Wr = params["Wr"][l]
        Wi = params["Wi"][l]
        br = params["lin_br"][l]
        bi = params["lin_bi"][l]
        d = params["diag"][l][:, None]
        bias = params["bias"][l]
        real = a_r * q_r - a_i * q_i + (b_r * p_r - b_i * p_i)
        imag = a_r * q_i + a_i * q_r + (b_r * p_i + b_i * p_r)
        real_ = jnp.tanh((real @ Wr.T + br) - (imag @ Wi.T + bi))
        imag_ = jnp.tanh((imag @ Wr.T + br) + (real @ Wi.T + bi))
        real2 = real_ @ (d * Wr) - imag_ @ (d * Wi)
        imag2 = imag_ @ (d * Wr) + real_ @ (d * Wi) + bias
        q_r = q_r + (b_r * real2 - b_i * imag2)
        q_i = q_i + (b_r * imag2 + b_i * real2)
        p_r = p_r - (a_r * real2 - a_i * imag2)
        p_i = p_i - (a_r * imag2 + a_i * real2)
        q = q + q_r + 1j * q_i
        p = p + p_r + 1j * p_i
    return p, q


def init_params(key, layer_sizes, N, h):
    # All layer_sizes equal so per-layer params stack on a leading L axis.
    assert len(set(layer_sizes)) == 1, "kernel stacks layers; sizes must match"
    L, M = len(layer_sizes), layer_sizes[0]
    ks = jax.random.split(key, 6)
    return {
        "Wr": h * jax.random.normal(ks[0], (L, M, N), jnp.float32),
        # torch zeroes the imag weight at init; use small randoms here to
        # exercise the full compute path (init is synthetic / deterministic).
        "Wi": h * jax.random.normal(ks[1], (L, M, N), jnp.float32),
        "lin_br": jnp.zeros((L, M), jnp.float32),              # real bias zeroed
        "lin_bi": 0.01 * jax.random.normal(ks[2], (L, M), jnp.float32),
        "bias": jnp.zeros((L, N), jnp.float32),                # self.biases
        "diag": h * jax.random.normal(ks[3], (L, M), jnp.float32),
        "a": h * jax.random.normal(ks[4], (L, 4), jnp.float32),
    }


if __name__ == "__main__":
    B, N, h = 8, 32, 0.1
    layer_sizes = [16, 16, 16]

    key = jax.random.PRNGKey(0)
    kp, kq, kparam = jax.random.split(key, 3)
    params = init_params(kparam, layer_sizes, N, h)

    p = (jax.random.normal(kp, (B, N), jnp.float32)
         + 1j * jax.random.normal(jax.random.fold_in(kp, 1), (B, N), jnp.float32)
         ).astype(jnp.complex64)
    q = (jax.random.normal(kq, (B, N), jnp.float32)
         + 1j * jax.random.normal(jax.random.fold_in(kq, 1), (B, N), jnp.float32)
         ).astype(jnp.complex64)

    fwd = jax.jit(complex_sympnet_forward)
    p_out, q_out = fwd(p, q, params)
    jax.block_until_ready((p_out, q_out))

    p_ref, q_ref = reference_forward(p, q, params)
    assert jnp.allclose(p_out, p_ref, rtol=2e-2, atol=5e-3), "p mismatch"
    assert jnp.allclose(q_out, q_ref, rtol=2e-2, atol=5e-3), "q mismatch"

    print("KERNEL_OK")
</pallas_src>

<mosaic_0001>
module attributes {stable_mosaic.version = 11 : i64} {
  func.func @_sympnet_kernel(%arg0: i32, %arg1: memref<12xf32, #tpu.memory_space<smem>>, %arg2: memref<3x128x256xbf16, #tpu.memory_space<vmem>>, %arg3: memref<3x128x256xbf16, #tpu.memory_space<vmem>>, %arg4: memref<3x1x128xf32, #tpu.memory_space<vmem>>, %arg5: memref<3x1x128xf32, #tpu.memory_space<vmem>>, %arg6: memref<3x1x128xf32, #tpu.memory_space<vmem>>, %arg7: memref<3x1x128xf32, #tpu.memory_space<vmem>>, %arg8: memref<4x8x128xf32, #tpu.memory_space<vmem>>, %arg9: memref<4x8x128xf32, #tpu.memory_space<vmem>>, %arg10: memref<16x128xbf16, #tpu.memory_space<vmem>>, %arg11: memref<16x128xbf16, #tpu.memory_space<vmem>>) attributes {dimension_semantics = [#tpu.dimension_semantics<parallel>], iteration_bounds = array<i64: 1>, scalar_prefetch = 0 : i64, scratch_operands = 2 : i64, tpu.core_type = #tpu.core_type<tc>, window_params = [{transform_indices = @transform_0, window_bounds = array<i64: 12>}, {pipeline_mode = #tpu.pipeline_mode<synchronous>, transform_indices = @transform_1, window_bounds = array<i64: 3, 128, 256>}, {pipeline_mode = #tpu.pipeline_mode<synchronous>, transform_indices = @transform_2, window_bounds = array<i64: 3, 128, 256>}, {pipeline_mode = #tpu.pipeline_mode<synchronous>, transform_indices = @transform_3, window_bounds = array<i64: 3, 1, 128>}, {pipeline_mode = #tpu.pipeline_mode<synchronous>, transform_indices = @transform_4, window_bounds = array<i64: 3, 1, 128>}, {pipeline_mode = #tpu.pipeline_mode<synchronous>, transform_indices = @transform_5, window_bounds = array<i64: 3, 1, 128>}, {pipeline_mode = #tpu.pipeline_mode<synchronous>, transform_indices = @transform_6, window_bounds = array<i64: 3, 1, 128>}, {transform_indices = @transform_7, window_bounds = array<i64: 4, 8, 128>}, {transform_indices = @transform_8, window_bounds = array<i64: 4, 8, 128>}]} {
    %c0 = arith.constant 0 : index
    %c0_0 = arith.constant 0 : index
    %c0_1 = arith.constant 0 : index
    %0 = vector.load %arg8[%c0, %c0_0, %c0_1] : memref<4x8x128xf32, #tpu.memory_space<vmem>>, vector<1x8x128xf32>
    %1 = vector.shape_cast %0 : vector<1x8x128xf32> to vector<8x128xf32>
    %c1 = arith.constant 1 : index
    %c0_2 = arith.constant 0 : index
    %c0_3 = arith.constant 0 : index
    %2 = vector.load %arg8[%c1, %c0_2, %c0_3] : memref<4x8x128xf32, #tpu.memory_space<vmem>>, vector<1x8x128xf32>
    %3 = vector.shape_cast %2 : vector<1x8x128xf32> to vector<8x128xf32>
    %c2 = arith.constant 2 : index
    %c0_4 = arith.constant 0 : index
    %c0_5 = arith.constant 0 : index
    %4 = vector.load %arg8[%c2, %c0_4, %c0_5] : memref<4x8x128xf32, #tpu.memory_space<vmem>>, vector<1x8x128xf32>
    %5 = vector.shape_cast %4 : vector<1x8x128xf32> to vector<8x128xf32>
    %c3 = arith.constant 3 : index
    %c0_6 = arith.constant 0 : index
    %c0_7 = arith.constant 0 : index
    %6 = vector.load %arg8[%c3, %c0_6, %c0_7] : memref<4x8x128xf32, #tpu.memory_space<vmem>>, vector<1x8x128xf32>
    %7 = vector.shape_cast %6 : vector<1x8x128xf32> to vector<8x128xf32>
    %c0_8 = arith.constant 0 : index
    %c0_9 = arith.constant 0 : index
    %c0_10 = arith.constant 0 : index
    %8 = vector.load %arg9[%c0_8, %c0_9, %c0_10] : memref<4x8x128xf32, #tpu.memory_space<vmem>>, vector<1x8x128xf32>
    %9 = vector.shape_cast %8 : vector<1x8x128xf32> to vector<8x128xf32>
    %10 = vector.shape_cast %1 : vector<8x128xf32> to vector<1x8x128xf32>
    tpu.vector_store %arg9[%c0_8, %c0_9, %c0_10], %10 {strides = array<i32>} : memref<4x8x128xf32, #tpu.memory_space<vmem>>, vector<1x8x128xf32>,
    %c1_11 = arith.constant 1 : index
    %c0_12 = arith.constant 0 : index
    %c0_13 = arith.constant 0 : index
    %11 = vector.load %arg9[%c1_11, %c0_12, %c0_13] : memref<4x8x128xf32, #tpu.memory_space<vmem>>, vector<1x8x128xf32>
    %12 = vector.shape_cast %11 : vector<1x8x128xf32> to vector<8x128xf32>
    %13 = vector.shape_cast %3 : vector<8x128xf32> to vector<1x8x128xf32>
    tpu.vector_store %arg9[%c1_11, %c0_12, %c0_13], %13 {strides = array<i32>} : memref<4x8x128xf32, #tpu.memory_space<vmem>>, vector<1x8x128xf32>,
    %c2_14 = arith.constant 2 : index
    %c0_15 = arith.constant 0 : index
    %c0_16 = arith.constant 0 : index
    %14 = vector.load %arg9[%c2_14, %c0_15, %c0_16] : memref<4x8x128xf32, #tpu.memory_space<vmem>>, vector<1x8x128xf32>
    %15 = vector.shape_cast %14 : vector<1x8x128xf32> to vector<8x128xf32>
    %16 = vector.shape_cast %5 : vector<8x128xf32> to vector<1x8x128xf32>
    tpu.vector_store %arg9[%c2_14, %c0_15, %c0_16], %16 {strides = array<i32>} : memref<4x8x128xf32, #tpu.memory_space<vmem>>, vector<1x8x128xf32>,
    %c3_17 = arith.constant 3 : index
    %c0_18 = arith.constant 0 : index
    %c0_19 = arith.constant 0 : index
    %17 = vector.load %arg9[%c3_17, %c0_18, %c0_19] : memref<4x8x128xf32, #tpu.memory_space<vmem>>, vector<1x8x128xf32>
    %18 = vector.shape_cast %17 : vector<1x8x128xf32> to vector<8x128xf32>
    %19 = vector.shape_cast %7 : vector<8x128xf32> to vector<1x8x128xf32>
    tpu.vector_store %arg9[%c3_17, %c0_18, %c0_19], %19 {strides = array<i32>} : memref<4x8x128xf32, #tpu.memory_space<vmem>>, vector<1x8x128xf32>,
    %c0_i32 = arith.constant 0 : i32
    %c4_i32 = arith.constant 4 : i32
    %20 = arith.muli %c4_i32, %c0_i32 : i32
    %c0_i32_20 = arith.constant 0 : i32
    %21 = arith.addi %20, %c0_i32_20 : i32
    %22 = arith.index_cast %21 : i32 to index
    %23 = memref.load %arg1[%22] : memref<12xf32, #tpu.memory_space<smem>>
    %c4_i32_21 = arith.constant 4 : i32
    %24 = arith.muli %c4_i32_21, %c0_i32 : i32
    %c1_i32 = arith.constant 1 : i32
    %25 = arith.addi %24, %c1_i32 : i32
    %26 = arith.index_cast %25 : i32 to index
    %27 = memref.load %arg1[%26] : memref<12xf32, #tpu.memory_space<smem>>
    %c4_i32_22 = arith.constant 4 : i32
    %28 = arith.muli %c4_i32_22, %c0_i32 : i32
    %c2_i32 = arith.constant 2 : i32
    %29 = arith.addi %28, %c2_i32 : i32
    %30 = arith.index_cast %29 : i32 to index
    %31 = memref.load %arg1[%30] : memref<12xf32, #tpu.memory_space<smem>>
    %c4_i32_23 = arith.constant 4 : i32
    %32 = arith.muli %c4_i32_23, %c0_i32 : i32
    %c3_i32 = arith.constant 3 : i32
    %33 = arith.addi %32, %c3_i32 : i32
    %34 = arith.index_cast %33 : i32 to index
    %35 = memref.load %arg1[%34] : memref<12xf32, #tpu.memory_space<smem>>
    %36 = vector.broadcast %23 : f32 to vector<8x128xf32>
    %37 = arith.mulf %36, %5 : vector<8x128xf32>
    %38 = vector.broadcast %27 : f32 to vector<8x128xf32>
    %39 = arith.mulf %38, %7 : vector<8x128xf32>
    %40 = arith.subf %37, %39 : vector<8x128xf32>
    %41 = vector.broadcast %31 : f32 to vector<8x128xf32>
    %42 = arith.mulf %41, %1 : vector<8x128xf32>
    %43 = vector.broadcast %35 : f32 to vector<8x128xf32>
    %44 = arith.mulf %43, %3 : vector<8x128xf32>
    %45 = arith.subf %42, %44 : vector<8x128xf32>
    %46 = arith.addf %40, %45 : vector<8x128xf32>
    %47 = vector.broadcast %23 : f32 to vector<8x128xf32>
    %48 = arith.mulf %47, %7 : vector<8x128xf32>
    %49 = vector.broadcast %27 : f32 to vector<8x128xf32>
    %50 = arith.mulf %49, %5 : vector<8x128xf32>
    %51 = arith.addf %48, %50 : vector<8x128xf32>
    %52 = vector.broadcast %31 : f32 to vector<8x128xf32>
    %53 = arith.mulf %52, %3 : vector<8x128xf32>
    %54 = vector.broadcast %35 : f32 to vector<8x128xf32>
    %55 = arith.mulf %54, %1 : vector<8x128xf32>
    %56 = arith.addf %53, %55 : vector<8x128xf32>
    %57 = arith.addf %51, %56 : vector<8x128xf32>
    %58 = arith.truncf %46 : vector<8x128xf32> to vector<8x128xbf16>
    %c0_24 = arith.constant 0 : index
    %c0_25 = arith.constant 0 : index
    %59 = vector.load %arg10[%c0_24, %c0_25] : memref<16x128xbf16, #tpu.memory_space<vmem>>, vector<8x128xbf16>
    tpu.vector_store %arg10[%c0_24, %c0_25], %58 {strides = array<i32>} : memref<16x128xbf16, #tpu.memory_space<vmem>>, vector<8x128xbf16>,
    %60 = arith.truncf %57 : vector<8x128xf32> to vector<8x128xbf16>
    %c8 = arith.constant 8 : index
    %c0_26 = arith.constant 0 : index
    %61 = vector.load %arg10[%c8, %c0_26] : memref<16x128xbf16, #tpu.memory_space<vmem>>, vector<8x128xbf16>
    tpu.vector_store %arg10[%c8, %c0_26], %60 {strides = array<i32>} : memref<16x128xbf16, #tpu.memory_space<vmem>>, vector<8x128xbf16>,
    %c0_27 = arith.constant 0 : index
    %c0_28 = arith.constant 0 : index
    %62 = vector.load %arg10[%c0_27, %c0_28] : memref<16x128xbf16, #tpu.memory_space<vmem>>, vector<16x128xbf16>
    %63 = arith.index_cast %c0_i32 : i32 to index
    %c0_29 = arith.constant 0 : index
    %c0_30 = arith.constant 0 : index
    %64 = vector.load %arg2[%63, %c0_29, %c0_30] : memref<3x128x256xbf16, #tpu.memory_space<vmem>>, vector<1x128x256xbf16>
    %65 = vector.shape_cast %64 : vector<1x128x256xbf16> to vector<128x256xbf16>
    %cst = arith.constant dense<0.000000e+00> : vector<16x256xf32>
    %66 = tpu.matmul %62, %65, %cst {dimension_numbers = #tpu.dot_dimension_numbers<[1], [0], [0], [1], [0, 0, 1, 1], [], []>} : vector<16x128xbf16>, vector<128x256xbf16>, vector<16x256xf32> -> vector<16x256xf32>
    %67 = arith.index_cast %c0_i32 : i32 to index
    %c0_31 = arith.constant 0 : index
    %c0_32 = arith.constant 0 : index
    %68 = vector.load %arg4[%67, %c0_31, %c0_32] : memref<3x1x128xf32, #tpu.memory_space<vmem>>, vector<1x1x128xf32>
    %69 = vector.shape_cast %68 : vector<1x1x128xf32> to vector<1x128xf32>
    %70 = arith.index_cast %c0_i32 : i32 to index
    %c0_33 = arith.constant 0 : index
    %c0_34 = arith.constant 0 : index
    %71 = vector.load %arg5[%70, %c0_33, %c0_34] : memref<3x1x128xf32, #tpu.memory_space<vmem>>, vector<1x1x128xf32>
    %72 = vector.shape_cast %71 : vector<1x1x128xf32> to vector<1x128xf32>
    %73 = vector.extract_strided_slice %66 {offsets = [0, 0], sizes = [8, 128], strides = [1, 1]} : vector<16x256xf32> to vector<8x128xf32>
    %74 = vector.extract_strided_slice %66 {offsets = [8, 128], sizes = [8, 128], strides = [1, 1]} : vector<16x256xf32> to vector<8x128xf32>
    %75 = arith.subf %73, %74 : vector<8x128xf32>
    %76 = vector.broadcast %69 : vector<1x128xf32> to vector<8x128xf32>
    %77 = arith.addf %75, %76 : vector<8x128xf32>
    %78 = math.tanh %77 : vector<8x128xf32>
    %79 = vector.extract_strided_slice %66 {offsets = [8, 0], sizes = [8, 128], strides = [1, 1]} : vector<16x256xf32> to vector<8x128xf32>
    %80 = vector.extract_strided_slice %66 {offsets = [0, 128], sizes = [8, 128], strides = [1, 1]} : vector<16x256xf32> to vector<8x128xf32>
    %81 = arith.addf %79, %80 : vector<8x128xf32>
    %82 = vector.broadcast %72 : vector<1x128xf32> to vector<8x128xf32>
    %83 = arith.addf %81, %82 : vector<8x128xf32>
    %84 = math.tanh %83 : vector<8x128xf32>
    %85 = arith.index_cast %c0_i32 : i32 to index
    %c0_35 = arith.constant 0 : index
    %c0_36 = arith.constant 0 : index
    %86 = vector.load %arg6[%85, %c0_35, %c0_36] : memref<3x1x128xf32, #tpu.memory_space<vmem>>, vector<1x1x128xf32>
    %87 = vector.shape_cast %86 : vector<1x1x128xf32> to vector<1x128xf32>
    %88 = vector.broadcast %87 : vector<1x128xf32> to vector<8x128xf32>
    %89 = arith.mulf %78, %88 : vector<8x128xf32>
    %90 = arith.truncf %89 : vector<8x128xf32> to vector<8x128xbf16>
    %c0_37 = arith.constant 0 : index
    %c0_38 = arith.constant 0 : index
    %91 = vector.load %arg11[%c0_37, %c0_38] : memref<16x128xbf16, #tpu.memory_space<vmem>>, vector<8x128xbf16>
    tpu.vector_store %arg11[%c0_37, %c0_38], %90 {strides = array<i32>} : memref<16x128xbf16, #tpu.memory_space<vmem>>, vector<8x128xbf16>,
    %92 = vector.broadcast %87 : vector<1x128xf32> to vector<8x128xf32>
    %93 = arith.mulf %84, %92 : vector<8x128xf32>
    %94 = arith.truncf %93 : vector<8x128xf32> to vector<8x128xbf16>
    %c8_39 = arith.constant 8 : index
    %c0_40 = arith.constant 0 : index
    %95 = vector.load %arg11[%c8_39, %c0_40] : memref<16x128xbf16, #tpu.memory_space<vmem>>, vector<8x128xbf16>
    tpu.vector_store %arg11[%c8_39, %c0_40], %94 {strides = array<i32>} : memref<16x128xbf16, #tpu.memory_space<vmem>>, vector<8x128xbf16>,
    %c0_41 = arith.constant 0 : index
    %c0_42 = arith.constant 0 : index
    %96 = vector.load %arg11[%c0_41, %c0_42] : memref<16x128xbf16, #tpu.memory_space<vmem>>, vector<16x128xbf16>
    %97 = arith.index_cast %c0_i32 : i32 to index
    %c0_43 = arith.constant 0 : index
    %c0_44 = arith.constant 0 : index
    %98 = vector.load %arg3[%97, %c0_43, %c0_44] : memref<3x128x256xbf16, #tpu.memory_space<vmem>>, vector<1x128x256xbf16>
    %99 = vector.shape_cast %98 : vector<1x128x256xbf16> to vector<128x256xbf16>
    %cst_45 = arith.constant dense<0.000000e+00> : vector<16x256xf32>
    %100 = tpu.matmul %96, %99, %cst_45 {dimension_numbers = #tpu.dot_dimension_numbers<[1], [0], [0], [1], [0, 0, 1, 1], [], []>} : vector<16x128xbf16>, vector<128x256xbf16>, vector<16x256xf32> -> vector<16x256xf32>
    %101 = vector.extract_strided_slice %100 {offsets = [0, 0], sizes = [8, 128], strides = [1, 1]} : vector<16x256xf32> to vector<8x128xf32>
    %102 = vector.extract_strided_slice %100 {offsets = [8, 128], sizes = [8, 128], strides = [1, 1]} : vector<16x256xf32> to vector<8x128xf32>
    %103 = arith.subf %101, %102 : vector<8x128xf32>
    %104 = vector.extract_strided_slice %100 {offsets = [8, 0], sizes = [8, 128], strides = [1, 1]} : vector<16x256xf32> to vector<8x128xf32>
    %105 = vector.extract_strided_slice %100 {offsets = [0, 128], sizes = [8, 128], strides = [1, 1]} : vector<16x256xf32> to vector<8x128xf32>
    %106 = arith.addf %104, %105 : vector<8x128xf32>
    %107 = arith.index_cast %c0_i32 : i32 to index
    %c0_46 = arith.constant 0 : index
    %c0_47 = arith.constant 0 : index
    %108 = vector.load %arg7[%107, %c0_46, %c0_47] : memref<3x1x128xf32, #tpu.memory_space<vmem>>, vector<1x1x128xf32>
    %109 = vector.shape_cast %108 : vector<1x1x128xf32> to vector<1x128xf32>
    %110 = vector.broadcast %109 : vector<1x128xf32> to vector<8x128xf32>
    %111 = arith.addf %106, %110 : vector<8x128xf32>
    %112 = vector.broadcast %31 : f32 to vector<8x128xf32>
    %113 = arith.mulf %112, %103 : vector<8x128xf32>
    %114 = vector.broadcast %35 : f32 to vector<8x128xf32>
    %115 = arith.mulf %114, %111 : vector<8x128xf32>
    %116 = arith.subf %113, %115 : vector<8x128xf32>
    %117 = arith.addf %5, %116 : vector<8x128xf32>
    %118 = vector.broadcast %31 : f32 to vector<8x128xf32>
    %119 = arith.mulf %118, %111 : vector<8x128xf32>
    %120 = vector.broadcast %35 : f32 to vector<8x128xf32>
    %121 = arith.mulf %120, %103 : vector<8x128xf32>
    %122 = arith.addf %119, %121 : vector<8x128xf32>
    %123 = arith.addf %7, %122 : vector<8x128xf32>
    %124 = vector.broadcast %23 : f32 to vector<8x128xf32>
    %125 = arith.mulf %124, %103 : vector<8x128xf32>
    %126 = vector.broadcast %27 : f32 to vector<8x128xf32>
    %127 = arith.mulf %126, %111 : vector<8x128xf32>
    %128 = arith.subf %125, %127 : vector<8x128xf32>
    %129 = arith.subf %1, %128 : vector<8x128xf32>
    %130 = vector.broadcast %23 : f32 to vector<8x128xf32>
    %131 = arith.mulf %130, %111 : vector<8x128xf32>
    %132 = vector.broadcast %27 : f32 to vector<8x128xf32>
    %133 = arith.mulf %132, %103 : vector<8x128xf32>
    %134 = arith.addf %131, %133 : vector<8x128xf32>
    %135 = arith.subf %3, %134 : vector<8x128xf32>
    %c0_48 = arith.constant 0 : index
    %c0_49 = arith.constant 0 : index
    %c0_50 = arith.constant 0 : index
    %136 = vector.load %arg9[%c0_48, %c0_49, %c0_50] : memref<4x8x128xf32, #tpu.memory_space<vmem>>, vector<1x8x128xf32>
    %137 = vector.shape_cast %136 : vector<1x8x128xf32> to vector<8x128xf32>
    %138 = arith.addf %137, %129 : vector<8x128xf32>
    %c0_51 = arith.constant 0 : index
    %c0_52 = arith.constant 0 : index
    %c0_53 = arith.constant 0 : index
    %139 = vector.load %arg9[%c0_51, %c0_52, %c0_53] : memref<4x8x128xf32, #tpu.memory_space<vmem>>, vector<1x8x128xf32>
    %140 = vector.shape_cast %139 : vector<1x8x128xf32> to vector<8x128xf32>
    %141 = vector.shape_cast %138 : vector<8x128xf32> to vector<1x8x128xf32>
    tpu.vector_store %arg9[%c0_51, %c0_52, %c0_53], %141 {strides = array<i32>} : memref<4x8x128xf32, #tpu.memory_space<vmem>>, vector<1x8x128xf32>,
    %c1_54 = arith.constant 1 : index
    %c0_55 = arith.constant 0 : index
    %c0_56 = arith.constant 0 : index
    %142 = vector.load %arg9[%c1_54, %c0_55, %c0_56] : memref<4x8x128xf32, #tpu.memory_space<vmem>>, vector<1x8x128xf32>
    %143 = vector.shape_cast %142 : vector<1x8x128xf32> to vector<8x128xf32>
    %144 = arith.addf %143, %135 : vector<8x128xf32>
    %c1_57 = arith.constant 1 : index
    %c0_58 = arith.constant 0 : index
    %c0_59 = arith.constant 0 : index
    %145 = vector.load %arg9[%c1_57, %c0_58, %c0_59] : memref<4x8x128xf32, #tpu.memory_space<vmem>>, vector<1x8x128xf32>
    %146 = vector.shape_cast %145 : vector<1x8x128xf32> to vector<8x128xf32>
    %147 = vector.shape_cast %144 : vector<8x128xf32> to vector<1x8x128xf32>
    tpu.vector_store %arg9[%c1_57, %c0_58, %c0_59], %147 {strides = array<i32>} : memref<4x8x128xf32, #tpu.memory_space<vmem>>, vector<1x8x128xf32>,
    %c2_60 = arith.constant 2 : index
    %c0_61 = arith.constant 0 : index
    %c0_62 = arith.constant 0 : index
    %148 = vector.load %arg9[%c2_60, %c0_61, %c0_62] : memref<4x8x128xf32, #tpu.memory_space<vmem>>, vector<1x8x128xf32>
    %149 = vector.shape_cast %148 : vector<1x8x128xf32> to vector<8x128xf32>
    %150 = arith.addf %149, %117 : vector<8x128xf32>
    %c2_63 = arith.constant 2 : index
    %c0_64 = arith.constant 0 : index
    %c0_65 = arith.constant 0 : index
    %151 = vector.load %arg9[%c2_63, %c0_64, %c0_65] : memref<4x8x128xf32, #tpu.memory_space<vmem>>, vector<1x8x128xf32>
    %152 = vector.shape_cast %151 : vector<1x8x128xf32> to vector<8x128xf32>
    %153 = vector.shape_cast %150 : vector<8x128xf32> to vector<1x8x128xf32>
    tpu.vector_store %arg9[%c2_63, %c0_64, %c0_65], %153 {strides = array<i32>} : memref<4x8x128xf32, #tpu.memory_space<vmem>>, vector<1x8x128xf32>,
    %c3_66 = arith.constant 3 : index
    %c0_67 = arith.constant 0 : index
    %c0_68 = arith.constant 0 : index
    %154 = vector.load %arg9[%c3_66, %c0_67, %c0_68] : memref<4x8x128xf32, #tpu.memory_space<vmem>>, vector<1x8x128xf32>
    %155 = vector.shape_cast %154 : vector<1x8x128xf32> to vector<8x128xf32>
    %156 = arith.addf %155, %123 : vector<8x128xf32>
    %c3_69 = arith.constant 3 : index
    %c0_70 = arith.constant 0 : index
    %c0_71 = arith.constant 0 : index
    %157 = vector.load %arg9[%c3_69, %c0_70, %c0_71] : memref<4x8x128xf32, #tpu.memory_space<vmem>>, vector<1x8x128xf32>
    %158 = vector.shape_cast %157 : vector<1x8x128xf32> to vector<8x128xf32>
    %159 = vector.shape_cast %156 : vector<8x128xf32> to vector<1x8x128xf32>
    tpu.vector_store %arg9[%c3_69, %c0_70, %c0_71], %159 {strides = array<i32>} : memref<4x8x128xf32, #tpu.memory_space<vmem>>, vector<1x8x128xf32>,
    %c1_i32_72 = arith.constant 1 : i32
    %c4_i32_73 = arith.constant 4 : i32
    %160 = arith.muli %c4_i32_73, %c1_i32_72 : i32
    %c0_i32_74 = arith.constant 0 : i32
    %161 = arith.addi %160, %c0_i32_74 : i32
    %162 = arith.index_cast %161 : i32 to index
    %163 = memref.load %arg1[%162] : memref<12xf32, #tpu.memory_space<smem>>
    %c4_i32_75 = arith.constant 4 : i32
    %164 = arith.muli %c4_i32_75, %c1_i32_72 : i32
    %c1_i32_76 = arith.constant 1 : i32
    %165 = arith.addi %164, %c1_i32_76 : i32
    %166 = arith.index_cast %165 : i32 to index
    %167 = memref.load %arg1[%166] : memref<12xf32, #tpu.memory_space<smem>>
    %c4_i32_77 = arith.constant 4 : i32
    %168 = arith.muli %c4_i32_77, %c1_i32_72 : i32
    %c2_i32_78 = arith.constant 2 : i32
    %169 = arith.addi %168, %c2_i32_78 : i32
    %170 = arith.index_cast %169 : i32 to index
    %171 = memref.load %arg1[%170] : memref<12xf32, #tpu.memory_space<smem>>
    %c4_i32_79 = arith.constant 4 : i32
    %172 = arith.muli %c4_i32_79, %c1_i32_72 : i32
    %c3_i32_80 = arith.constant 3 : i32
    %173 = arith.addi %172, %c3_i32_80 : i32
    %174 = arith.index_cast %173 : i32 to index
    %175 = memref.load %arg1[%174] : memref<12xf32, #tpu.memory_space<smem>>
    %176 = vector.broadcast %163 : f32 to vector<8x128xf32>
    %177 = arith.mulf %176, %117 : vector<8x128xf32>
    %178 = vector.broadcast %167 : f32 to vector<8x128xf32>
    %179 = arith.mulf %178, %123 : vector<8x128xf32>
    %180 = arith.subf %177, %179 : vector<8x128xf32>
    %181 = vector.broadcast %171 : f32 to vector<8x128xf32>
    %182 = arith.mulf %181, %129 : vector<8x128xf32>
    %183 = vector.broadcast %175 : f32 to vector<8x128xf32>
    %184 = arith.mulf %183, %135 : vector<8x128xf32>
    %185 = arith.subf %182, %184 : vector<8x128xf32>
    %186 = arith.addf %180, %185 : vector<8x128xf32>
    %187 = vector.broadcast %163 : f32 to vector<8x128xf32>
    %188 = arith.mulf %187, %123 : vector<8x128xf32>
    %189 = vector.broadcast %167 : f32 to vector<8x128xf32>
    %190 = arith.mulf %189, %117 : vector<8x128xf32>
    %191 = arith.addf %188, %190 : vector<8x128xf32>
    %192 = vector.broadcast %171 : f32 to vector<8x128xf32>
    %193 = arith.mulf %192, %135 : vector<8x128xf32>
    %194 = vector.broadcast %175 : f32 to vector<8x128xf32>
    %195 = arith.mulf %194, %129 : vector<8x128xf32>
    %196 = arith.addf %193, %195 : vector<8x128xf32>
    %197 = arith.addf %191, %196 : vector<8x128xf32>
    %198 = arith.truncf %186 : vector<8x128xf32> to vector<8x128xbf16>
    %c0_81 = arith.constant 0 : index
    %c0_82 = arith.constant 0 : index
    %199 = vector.load %arg10[%c0_81, %c0_82] : memref<16x128xbf16, #tpu.memory_space<vmem>>, vector<8x128xbf16>
    tpu.vector_store %arg10[%c0_81, %c0_82], %198 {strides = array<i32>} : memref<16x128xbf16, #tpu.memory_space<vmem>>, vector<8x128xbf16>,
    %200 = arith.truncf %197 : vector<8x128xf32> to vector<8x128xbf16>
    %c8_83 = arith.constant 8 : index
    %c0_84 = arith.constant 0 : index
    %201 = vector.load %arg10[%c8_83, %c0_84] : memref<16x128xbf16, #tpu.memory_space<vmem>>, vector<8x128xbf16>
    tpu.vector_store %arg10[%c8_83, %c0_84], %200 {strides = array<i32>} : memref<16x128xbf16, #tpu.memory_space<vmem>>, vector<8x128xbf16>,
    %c0_85 = arith.constant 0 : index
    %c0_86 = arith.constant 0 : index
    %202 = vector.load %arg10[%c0_85, %c0_86] : memref<16x128xbf16, #tpu.memory_space<vmem>>, vector<16x128xbf16>
    %203 = arith.index_cast %c1_i32_72 : i32 to index
    %c0_87 = arith.constant 0 : index
    %c0_88 = arith.constant 0 : index
    %204 = vector.load %arg2[%203, %c0_87, %c0_88] : memref<3x128x256xbf16, #tpu.memory_space<vmem>>, vector<1x128x256xbf16>
    %205 = vector.shape_cast %204 : vector<1x128x256xbf16> to vector<128x256xbf16>
    %cst_89 = arith.constant dense<0.000000e+00> : vector<16x256xf32>
    %206 = tpu.matmul %202, %205, %cst_89 {dimension_numbers = #tpu.dot_dimension_numbers<[1], [0], [0], [1], [0, 0, 1, 1], [], []>} : vector<16x128xbf16>, vector<128x256xbf16>, vector<16x256xf32> -> vector<16x256xf32>
    %207 = arith.index_cast %c1_i32_72 : i32 to index
    %c0_90 = arith.constant 0 : index
    %c0_91 = arith.constant 0 : index
    %208 = vector.load %arg4[%207, %c0_90, %c0_91] : memref<3x1x128xf32, #tpu.memory_space<vmem>>, vector<1x1x128xf32>
    %209 = vector.shape_cast %208 : vector<1x1x128xf32> to vector<1x128xf32>
    %210 = arith.index_cast %c1_i32_72 : i32 to index
    %c0_92 = arith.constant 0 : index
    %c0_93 = arith.constant 0 : index
    %211 = vector.load %arg5[%210, %c0_92, %c0_93] : memref<3x1x128xf32, #tpu.memory_space<vmem>>, vector<1x1x128xf32>
    %212 = vector.shape_cast %211 : vector<1x1x128xf32> to vector<1x128xf32>
    %213 = vector.extract_strided_slice %206 {offsets = [0, 0], sizes = [8, 128], strides = [1, 1]} : vector<16x256xf32> to vector<8x128xf32>
    %214 = vector.extract_strided_slice %206 {offsets = [8, 128], sizes = [8, 128], strides = [1, 1]} : vector<16x256xf32> to vector<8x128xf32>
    %215 = arith.subf %213, %214 : vector<8x128xf32>
    %216 = vector.broadcast %209 : vector<1x128xf32> to vector<8x128xf32>
    %217 = arith.addf %215, %216 : vector<8x128xf32>
    %218 = math.tanh %217 : vector<8x128xf32>
    %219 = vector.extract_strided_slice %206 {offsets = [8, 0], sizes = [8, 128], strides = [1, 1]} : vector<16x256xf32> to vector<8x128xf32>
    %220 = vector.extract_strided_slice %206 {offsets = [0, 128], sizes = [8, 128], strides = [1, 1]} : vector<16x256xf32> to vector<8x128xf32>
    %221 = arith.addf %219, %220 : vector<8x128xf32>
    %222 = vector.broadcast %212 : vector<1x128xf32> to vector<8x128xf32>
    %223 = arith.addf %221, %222 : vector<8x128xf32>
    %224 = math.tanh %223 : vector<8x128xf32>
    %225 = arith.index_cast %c1_i32_72 : i32 to index
    %c0_94 = arith.constant 0 : index
    %c0_95 = arith.constant 0 : index
    %226 = vector.load %arg6[%225, %c0_94, %c0_95] : memref<3x1x128xf32, #tpu.memory_space<vmem>>, vector<1x1x128xf32>
    %227 = vector.shape_cast %226 : vector<1x1x128xf32> to vector<1x128xf32>
    %228 = vector.broadcast %227 : vector<1x128xf32> to vector<8x128xf32>
    %229 = arith.mulf %218, %228 : vector<8x128xf32>
    %230 = arith.truncf %229 : vector<8x128xf32> to vector<8x128xbf16>
    %c0_96 = arith.constant 0 : index
    %c0_97 = arith.constant 0 : index
    %231 = vector.load %arg11[%c0_96, %c0_97] : memref<16x128xbf16, #tpu.memory_space<vmem>>, vector<8x128xbf16>
    tpu.vector_store %arg11[%c0_96, %c0_97], %230 {strides = array<i32>} : memref<16x128xbf16, #tpu.memory_space<vmem>>, vector<8x128xbf16>,
    %232 = vector.broadcast %227 : vector<1x128xf32> to vector<8x128xf32>
    %233 = arith.mulf %224, %232 : vector<8x128xf32>
    %234 = arith.truncf %233 : vector<8x128xf32> to vector<8x128xbf16>
    %c8_98 = arith.constant 8 : index
    %c0_99 = arith.constant 0 : index
    %235 = vector.load %arg11[%c8_98, %c0_99] : memref<16x128xbf16, #tpu.memory_space<vmem>>, vector<8x128xbf16>
    tpu.vector_store %arg11[%c8_98, %c0_99], %234 {strides = array<i32>} : memref<16x128xbf16, #tpu.memory_space<vmem>>, vector<8x128xbf16>,
    %c0_100 = arith.constant 0 : index
    %c0_101 = arith.constant 0 : index
    %236 = vector.load %arg11[%c0_100, %c0_101] : memref<16x128xbf16, #tpu.memory_space<vmem>>, vector<16x128xbf16>
    %237 = arith.index_cast %c1_i32_72 : i32 to index
    %c0_102 = arith.constant 0 : index
    %c0_103 = arith.constant 0 : index
    %238 = vector.load %arg3[%237, %c0_102, %c0_103] : memref<3x128x256xbf16, #tpu.memory_space<vmem>>, vector<1x128x256xbf16>
    %239 = vector.shape_cast %238 : vector<1x128x256xbf16> to vector<128x256xbf16>
    %cst_104 = arith.constant dense<0.000000e+00> : vector<16x256xf32>
    %240 = tpu.matmul %236, %239, %cst_104 {dimension_numbers = #tpu.dot_dimension_numbers<[1], [0], [0], [1], [0, 0, 1, 1], [], []>} : vector<16x128xbf16>, vector<128x256xbf16>, vector<16x256xf32> -> vector<16x256xf32>
    %241 = vector.extract_strided_slice %240 {offsets = [0, 0], sizes = [8, 128], strides = [1, 1]} : vector<16x256xf32> to vector<8x128xf32>
    %242 = vector.extract_strided_slice %240 {offsets = [8, 128], sizes = [8, 128], strides = [1, 1]} : vector<16x256xf32> to vector<8x128xf32>
    %243 = arith.subf %241, %242 : vector<8x128xf32>
    %244 = vector.extract_strided_slice %240 {offsets = [8, 0], sizes = [8, 128], strides = [1, 1]} : vector<16x256xf32> to vector<8x128xf32>
    %245 = vector.extract_strided_slice %240 {offsets = [0, 128], sizes = [8, 128], strides = [1, 1]} : vector<16x256xf32> to vector<8x128xf32>
    %246 = arith.addf %244, %245 : vector<8x128xf32>
    %247 = arith.index_cast %c1_i32_72 : i32 to index
    %c0_105 = arith.constant 0 : index
    %c0_106 = arith.constant 0 : index
    %248 = vector.load %arg7[%247, %c0_105, %c0_106] : memref<3x1x128xf32, #tpu.memory_space<vmem>>, vector<1x1x128xf32>
    %249 = vector.shape_cast %248 : vector<1x1x128xf32> to vector<1x128xf32>
    %250 = vector.broadcast %249 : vector<1x128xf32> to vector<8x128xf32>
    %251 = arith.addf %246, %250 : vector<8x128xf32>
    %252 = vector.broadcast %171 : f32 to vector<8x128xf32>
    %253 = arith.mulf %252, %243 : vector<8x128xf32>
    %254 = vector.broadcast %175 : f32 to vector<8x128xf32>
    %255 = arith.mulf %254, %251 : vector<8x128xf32>
    %256 = arith.subf %253, %255 : vector<8x128xf32>
    %257 = arith.addf %117, %256 : vector<8x128xf32>
    %258 = vector.broadcast %171 : f32 to vector<8x128xf32>
    %259 = arith.mulf %258, %251 : vector<8x128xf32>
    %260 = vector.broadcast %175 : f32 to vector<8x128xf32>
    %261 = arith.mulf %260, %243 : vector<8x128xf32>
    %262 = arith.addf %259, %261 : vector<8x128xf32>
    %263 = arith.addf %123, %262 : vector<8x128xf32>
    %264 = vector.broadcast %163 : f32 to vector<8x128xf32>
    %265 = arith.mulf %264, %243 : vector<8x128xf32>
    %266 = vector.broadcast %167 : f32 to vector<8x128xf32>
    %267 = arith.mulf %266, %251 : vector<8x128xf32>
    %268 = arith.subf %265, %267 : vector<8x128xf32>
    %269 = arith.subf %129, %268 : vector<8x128xf32>
    %270 = vector.broadcast %163 : f32 to vector<8x128xf32>
    %271 = arith.mulf %270, %251 : vector<8x128xf32>
    %272 = vector.broadcast %167 : f32 to vector<8x128xf32>
    %273 = arith.mulf %272, %243 : vector<8x128xf32>
    %274 = arith.addf %271, %273 : vector<8x128xf32>
    %275 = arith.subf %135, %274 : vector<8x128xf32>
    %c0_107 = arith.constant 0 : index
    %c0_108 = arith.constant 0 : index
    %c0_109 = arith.constant 0 : index
    %276 = vector.load %arg9[%c0_107, %c0_108, %c0_109] : memref<4x8x128xf32, #tpu.memory_space<vmem>>, vector<1x8x128xf32>
    %277 = vector.shape_cast %276 : vector<1x8x128xf32> to vector<8x128xf32>
    %278 = arith.addf %277, %269 : vector<8x128xf32>
    %c0_110 = arith.constant 0 : index
    %c0_111 = arith.constant 0 : index
    %c0_112 = arith.constant 0 : index
    %279 = vector.load %arg9[%c0_110, %c0_111, %c0_112] : memref<4x8x128xf32, #tpu.memory_space<vmem>>, vector<1x8x128xf32>
    %280 = vector.shape_cast %279 : vector<1x8x128xf32> to vector<8x128xf32>
    %281 = vector.shape_cast %278 : vector<8x128xf32> to vector<1x8x128xf32>
    tpu.vector_store %arg9[%c0_110, %c0_111, %c0_112], %281 {strides = array<i32>} : memref<4x8x128xf32, #tpu.memory_space<vmem>>, vector<1x8x128xf32>,
    %c1_113 = arith.constant 1 : index
    %c0_114 = arith.constant 0 : index
    %c0_115 = arith.constant 0 : index
    %282 = vector.load %arg9[%c1_113, %c0_114, %c0_115] : memref<4x8x128xf32, #tpu.memory_space<vmem>>, vector<1x8x128xf32>
    %283 = vector.shape_cast %282 : vector<1x8x128xf32> to vector<8x128xf32>
    %284 = arith.addf %283, %275 : vector<8x128xf32>
    %c1_116 = arith.constant 1 : index
    %c0_117 = arith.constant 0 : index
    %c0_118 = arith.constant 0 : index
    %285 = vector.load %arg9[%c1_116, %c0_117, %c0_118] : memref<4x8x128xf32, #tpu.memory_space<vmem>>, vector<1x8x128xf32>
    %286 = vector.shape_cast %285 : vector<1x8x128xf32> to vector<8x128xf32>
    %287 = vector.shape_cast %284 : vector<8x128xf32> to vector<1x8x128xf32>
    tpu.vector_store %arg9[%c1_116, %c0_117, %c0_118], %287 {strides = array<i32>} : memref<4x8x128xf32, #tpu.memory_space<vmem>>, vector<1x8x128xf32>,
    %c2_119 = arith.constant 2 : index
    %c0_120 = arith.constant 0 : index
    %c0_121 = arith.constant 0 : index
    %288 = vector.load %arg9[%c2_119, %c0_120, %c0_121] : memref<4x8x128xf32, #tpu.memory_space<vmem>>, vector<1x8x128xf32>
    %289 = vector.shape_cast %288 : vector<1x8x128xf32> to vector<8x128xf32>
    %290 = arith.addf %289, %257 : vector<8x128xf32>
    %c2_122 = arith.constant 2 : index
    %c0_123 = arith.constant 0 : index
    %c0_124 = arith.constant 0 : index
    %291 = vector.load %arg9[%c2_122, %c0_123, %c0_124] : memref<4x8x128xf32, #tpu.memory_space<vmem>>, vector<1x8x128xf32>
    %292 = vector.shape_cast %291 : vector<1x8x128xf32> to vector<8x128xf32>
    %293 = vector.shape_cast %290 : vector<8x128xf32> to vector<1x8x128xf32>
    tpu.vector_store %arg9[%c2_122, %c0_123, %c0_124], %293 {strides = array<i32>} : memref<4x8x128xf32, #tpu.memory_space<vmem>>, vector<1x8x128xf32>,
    %c3_125 = arith.constant 3 : index
    %c0_126 = arith.constant 0 : index
    %c0_127 = arith.constant 0 : index
    %294 = vector.load %arg9[%c3_125, %c0_126, %c0_127] : memref<4x8x128xf32, #tpu.memory_space<vmem>>, vector<1x8x128xf32>
    %295 = vector.shape_cast %294 : vector<1x8x128xf32> to vector<8x128xf32>
    %296 = arith.addf %295, %263 : vector<8x128xf32>
    %c3_128 = arith.constant 3 : index
    %c0_129 = arith.constant 0 : index
    %c0_130 = arith.constant 0 : index
    %297 = vector.load %arg9[%c3_128, %c0_129, %c0_130] : memref<4x8x128xf32, #tpu.memory_space<vmem>>, vector<1x8x128xf32>
    %298 = vector.shape_cast %297 : vector<1x8x128xf32> to vector<8x128xf32>
    %299 = vector.shape_cast %296 : vector<8x128xf32> to vector<1x8x128xf32>
    tpu.vector_store %arg9[%c3_128, %c0_129, %c0_130], %299 {strides = array<i32>} : memref<4x8x128xf32, #tpu.memory_space<vmem>>, vector<1x8x128xf32>,
    %c2_i32_131 = arith.constant 2 : i32
    %c4_i32_132 = arith.constant 4 : i32
    %300 = arith.muli %c4_i32_132, %c2_i32_131 : i32
    %c0_i32_133 = arith.constant 0 : i32
    %301 = arith.addi %300, %c0_i32_133 : i32
    %302 = arith.index_cast %301 : i32 to index
    %303 = memref.load %arg1[%302] : memref<12xf32, #tpu.memory_space<smem>>
    %c4_i32_134 = arith.constant 4 : i32
    %304 = arith.muli %c4_i32_134, %c2_i32_131 : i32
    %c1_i32_135 = arith.constant 1 : i32
    %305 = arith.addi %304, %c1_i32_135 : i32
    %306 = arith.index_cast %305 : i32 to index
    %307 = memref.load %arg1[%306] : memref<12xf32, #tpu.memory_space<smem>>
    %c4_i32_136 = arith.constant 4 : i32
    %308 = arith.muli %c4_i32_136, %c2_i32_131 : i32
    %c2_i32_137 = arith.constant 2 : i32
    %309 = arith.addi %308, %c2_i32_137 : i32
    %310 = arith.index_cast %309 : i32 to index
    %311 = memref.load %arg1[%310] : memref<12xf32, #tpu.memory_space<smem>>
    %c4_i32_138 = arith.constant 4 : i32
    %312 = arith.muli %c4_i32_138, %c2_i32_131 : i32
    %c3_i32_139 = arith.constant 3 : i32
    %313 = arith.addi %312, %c3_i32_139 : i32
    %314 = arith.index_cast %313 : i32 to index
    %315 = memref.load %arg1[%314] : memref<12xf32, #tpu.memory_space<smem>>
    %316 = vector.broadcast %303 : f32 to vector<8x128xf32>
    %317 = arith.mulf %316, %257 : vector<8x128xf32>
    %318 = vector.broadcast %307 : f32 to vector<8x128xf32>
    %319 = arith.mulf %318, %263 : vector<8x128xf32>
    %320 = arith.subf %317, %319 : vector<8x128xf32>
    %321 = vector.broadcast %311 : f32 to vector<8x128xf32>
    %322 = arith.mulf %321, %269 : vector<8x128xf32>
    %323 = vector.broadcast %315 : f32 to vector<8x128xf32>
    %324 = arith.mulf %323, %275 : vector<8x128xf32>
    %325 = arith.subf %322, %324 : vector<8x128xf32>
    %326 = arith.addf %320, %325 : vector<8x128xf32>
    %327 = vector.broadcast %303 : f32 to vector<8x128xf32>
    %328 = arith.mulf %327, %263 : vector<8x128xf32>
    %329 = vector.broadcast %307 : f32 to vector<8x128xf32>
    %330 = arith.mulf %329, %257 : vector<8x128xf32>
    %331 = arith.addf %328, %330 : vector<8x128xf32>
    %332 = vector.broadcast %311 : f32 to vector<8x128xf32>
    %333 = arith.mulf %332, %275 : vector<8x128xf32>
    %334 = vector.broadcast %315 : f32 to vector<8x128xf32>
    %335 = arith.mulf %334, %269 : vector<8x128xf32>
    %336 = arith.addf %333, %335 : vector<8x128xf32>
    %337 = arith.addf %331, %336 : vector<8x128xf32>
    %338 = arith.truncf %326 : vector<8x128xf32> to vector<8x128xbf16>
    %c0_140 = arith.constant 0 : index
    %c0_141 = arith.constant 0 : index
    %339 = vector.load %arg10[%c0_140, %c0_141] : memref<16x128xbf16, #tpu.memory_space<vmem>>, vector<8x128xbf16>
    tpu.vector_store %arg10[%c0_140, %c0_141], %338 {strides = array<i32>} : memref<16x128xbf16, #tpu.memory_space<vmem>>, vector<8x128xbf16>,
    %340 = arith.truncf %337 : vector<8x128xf32> to vector<8x128xbf16>
    %c8_142 = arith.constant 8 : index
    %c0_143 = arith.constant 0 : index
    %341 = vector.load %arg10[%c8_142, %c0_143] : memref<16x128xbf16, #tpu.memory_space<vmem>>, vector<8x128xbf16>
    tpu.vector_store %arg10[%c8_142, %c0_143], %340 {strides = array<i32>} : memref<16x128xbf16, #tpu.memory_space<vmem>>, vector<8x128xbf16>,
    %c0_144 = arith.constant 0 : index
    %c0_145 = arith.constant 0 : index
    %342 = vector.load %arg10[%c0_144, %c0_145] : memref<16x128xbf16, #tpu.memory_space<vmem>>, vector<16x128xbf16>
    %343 = arith.index_cast %c2_i32_131 : i32 to index
    %c0_146 = arith.constant 0 : index
    %c0_147 = arith.constant 0 : index
    %344 = vector.load %arg2[%343, %c0_146, %c0_147] : memref<3x128x256xbf16, #tpu.memory_space<vmem>>, vector<1x128x256xbf16>
    %345 = vector.shape_cast %344 : vector<1x128x256xbf16> to vector<128x256xbf16>
    %cst_148 = arith.constant dense<0.000000e+00> : vector<16x256xf32>
    %346 = tpu.matmul %342, %345, %cst_148 {dimension_numbers = #tpu.dot_dimension_numbers<[1], [0], [0], [1], [0, 0, 1, 1], [], []>} : vector<16x128xbf16>, vector<128x256xbf16>, vector<16x256xf32> -> vector<16x256xf32>
    %347 = arith.index_cast %c2_i32_131 : i32 to index
    %c0_149 = arith.constant 0 : index
    %c0_150 = arith.constant 0 : index
    %348 = vector.load %arg4[%347, %c0_149, %c0_150] : memref<3x1x128xf32, #tpu.memory_space<vmem>>, vector<1x1x128xf32>
    %349 = vector.shape_cast %348 : vector<1x1x128xf32> to vector<1x128xf32>
    %350 = arith.index_cast %c2_i32_131 : i32 to index
    %c0_151 = arith.constant 0 : index
    %c0_152 = arith.constant 0 : index
    %351 = vector.load %arg5[%350, %c0_151, %c0_152] : memref<3x1x128xf32, #tpu.memory_space<vmem>>, vector<1x1x128xf32>
    %352 = vector.shape_cast %351 : vector<1x1x128xf32> to vector<1x128xf32>
    %353 = vector.extract_strided_slice %346 {offsets = [0, 0], sizes = [8, 128], strides = [1, 1]} : vector<16x256xf32> to vector<8x128xf32>
    %354 = vector.extract_strided_slice %346 {offsets = [8, 128], sizes = [8, 128], strides = [1, 1]} : vector<16x256xf32> to vector<8x128xf32>
    %355 = arith.subf %353, %354 : vector<8x128xf32>
    %356 = vector.broadcast %349 : vector<1x128xf32> to vector<8x128xf32>
    %357 = arith.addf %355, %356 : vector<8x128xf32>
    %358 = math.tanh %357 : vector<8x128xf32>
    %359 = vector.extract_strided_slice %346 {offsets = [8, 0], sizes = [8, 128], strides = [1, 1]} : vector<16x256xf32> to vector<8x128xf32>
    %360 = vector.extract_strided_slice %346 {offsets = [0, 128], sizes = [8, 128], strides = [1, 1]} : vector<16x256xf32> to vector<8x128xf32>
    %361 = arith.addf %359, %360 : vector<8x128xf32>
    %362 = vector.broadcast %352 : vector<1x128xf32> to vector<8x128xf32>
    %363 = arith.addf %361, %362 : vector<8x128xf32>
    %364 = math.tanh %363 : vector<8x128xf32>
    %365 = arith.index_cast %c2_i32_131 : i32 to index
    %c0_153 = arith.constant 0 : index
    %c0_154 = arith.constant 0 : index
    %366 = vector.load %arg6[%365, %c0_153, %c0_154] : memref<3x1x128xf32, #tpu.memory_space<vmem>>, vector<1x1x128xf32>
    %367 = vector.shape_cast %366 : vector<1x1x128xf32> to vector<1x128xf32>
    %368 = vector.broadcast %367 : vector<1x128xf32> to vector<8x128xf32>
    %369 = arith.mulf %358, %368 : vector<8x128xf32>
    %370 = arith.truncf %369 : vector<8x128xf32> to vector<8x128xbf16>
    %c0_155 = arith.constant 0 : index
    %c0_156 = arith.constant 0 : index
    %371 = vector.load %arg11[%c0_155, %c0_156] : memref<16x128xbf16, #tpu.memory_space<vmem>>, vector<8x128xbf16>
    tpu.vector_store %arg11[%c0_155, %c0_156], %370 {strides = array<i32>} : memref<16x128xbf16, #tpu.memory_space<vmem>>, vector<8x128xbf16>,
    %372 = vector.broadcast %367 : vector<1x128xf32> to vector<8x128xf32>
    %373 = arith.mulf %364, %372 : vector<8x128xf32>
    %374 = arith.truncf %373 : vector<8x128xf32> to vector<8x128xbf16>
    %c8_157 = arith.constant 8 : index
    %c0_158 = arith.constant 0 : index
    %375 = vector.load %arg11[%c8_157, %c0_158] : memref<16x128xbf16, #tpu.memory_space<vmem>>, vector<8x128xbf16>
    tpu.vector_store %arg11[%c8_157, %c0_158], %374 {strides = array<i32>} : memref<16x128xbf16, #tpu.memory_space<vmem>>, vector<8x128xbf16>,
    %c0_159 = arith.constant 0 : index
    %c0_160 = arith.constant 0 : index
    %376 = vector.load %arg11[%c0_159, %c0_160] : memref<16x128xbf16, #tpu.memory_space<vmem>>, vector<16x128xbf16>
    %377 = arith.index_cast %c2_i32_131 : i32 to index
    %c0_161 = arith.constant 0 : index
    %c0_162 = arith.constant 0 : index
    %378 = vector.load %arg3[%377, %c0_161, %c0_162] : memref<3x128x256xbf16, #tpu.memory_space<vmem>>, vector<1x128x256xbf16>
    %379 = vector.shape_cast %378 : vector<1x128x256xbf16> to vector<128x256xbf16>
    %cst_163 = arith.constant dense<0.000000e+00> : vector<16x256xf32>
    %380 = tpu.matmul %376, %379, %cst_163 {dimension_numbers = #tpu.dot_dimension_numbers<[1], [0], [0], [1], [0, 0, 1, 1], [], []>} : vector<16x128xbf16>, vector<128x256xbf16>, vector<16x256xf32> -> vector<16x256xf32>
    %381 = vector.extract_strided_slice %380 {offsets = [0, 0], sizes = [8, 128], strides = [1, 1]} : vector<16x256xf32> to vector<8x128xf32>
    %382 = vector.extract_strided_slice %380 {offsets = [8, 128], sizes = [8, 128], strides = [1, 1]} : vector<16x256xf32> to vector<8x128xf32>
    %383 = arith.subf %381, %382 : vector<8x128xf32>
    %384 = vector.extract_strided_slice %380 {offsets = [8, 0], sizes = [8, 128], strides = [1, 1]} : vector<16x256xf32> to vector<8x128xf32>
    %385 = vector.extract_strided_slice %380 {offsets = [0, 128], sizes = [8, 128], strides = [1, 1]} : vector<16x256xf32> to vector<8x128xf32>
    %386 = arith.addf %384, %385 : vector<8x128xf32>
    %387 = arith.index_cast %c2_i32_131 : i32 to index
    %c0_164 = arith.constant 0 : index
    %c0_165 = arith.constant 0 : index
    %388 = vector.load %arg7[%387, %c0_164, %c0_165] : memref<3x1x128xf32, #tpu.memory_space<vmem>>, vector<1x1x128xf32>
    %389 = vector.shape_cast %388 : vector<1x1x128xf32> to vector<1x128xf32>
    %390 = vector.broadcast %389 : vector<1x128xf32> to vector<8x128xf32>
    %391 = arith.addf %386, %390 : vector<8x128xf32>
    %392 = vector.broadcast %311 : f32 to vector<8x128xf32>
    %393 = arith.mulf %392, %383 : vector<8x128xf32>
    %394 = vector.broadcast %315 : f32 to vector<8x128xf32>
    %395 = arith.mulf %394, %391 : vector<8x128xf32>
    %396 = arith.subf %393, %395 : vector<8x128xf32>
    %397 = arith.addf %257, %396 : vector<8x128xf32>
    %398 = vector.broadcast %311 : f32 to vector<8x128xf32>
    %399 = arith.mulf %398, %391 : vector<8x128xf32>
    %400 = vector.broadcast %315 : f32 to vector<8x128xf32>
    %401 = arith.mulf %400, %383 : vector<8x128xf32>
    %402 = arith.addf %399, %401 : vector<8x128xf32>
    %403 = arith.addf %263, %402 : vector<8x128xf32>
    %404 = vector.broadcast %303 : f32 to vector<8x128xf32>
    %405 = arith.mulf %404, %383 : vector<8x128xf32>
    %406 = vector.broadcast %307 : f32 to vector<8x128xf32>
    %407 = arith.mulf %406, %391 : vector<8x128xf32>
    %408 = arith.subf %405, %407 : vector<8x128xf32>
    %409 = arith.subf %269, %408 : vector<8x128xf32>
    %410 = vector.broadcast %303 : f32 to vector<8x128xf32>
    %411 = arith.mulf %410, %391 : vector<8x128xf32>
    %412 = vector.broadcast %307 : f32 to vector<8x128xf32>
    %413 = arith.mulf %412, %383 : vector<8x128xf32>
    %414 = arith.addf %411, %413 : vector<8x128xf32>
    %415 = arith.subf %275, %414 : vector<8x128xf32>
    %c0_166 = arith.constant 0 : index
    %c0_167 = arith.constant 0 : index
    %c0_168 = arith.constant 0 : index
    %416 = vector.load %arg9[%c0_166, %c0_167, %c0_168] : memref<4x8x128xf32, #tpu.memory_space<vmem>>, vector<1x8x128xf32>
    %417 = vector.shape_cast %416 : vector<1x8x128xf32> to vector<8x128xf32>
    %418 = arith.addf %417, %409 : vector<8x128xf32>
    %c0_169 = arith.constant 0 : index
    %c0_170 = arith.constant 0 : index
    %c0_171 = arith.constant 0 : index
    %419 = vector.load %arg9[%c0_169, %c0_170, %c0_171] : memref<4x8x128xf32, #tpu.memory_space<vmem>>, vector<1x8x128xf32>
    %420 = vector.shape_cast %419 : vector<1x8x128xf32> to vector<8x128xf32>
    %421 = vector.shape_cast %418 : vector<8x128xf32> to vector<1x8x128xf32>
    tpu.vector_store %arg9[%c0_169, %c0_170, %c0_171], %421 {strides = array<i32>} : memref<4x8x128xf32, #tpu.memory_space<vmem>>, vector<1x8x128xf32>,
    %c1_172 = arith.constant 1 : index
    %c0_173 = arith.constant 0 : index
    %c0_174 = arith.constant 0 : index
    %422 = vector.load %arg9[%c1_172, %c0_173, %c0_174] : memref<4x8x128xf32, #tpu.memory_space<vmem>>, vector<1x8x128xf32>
    %423 = vector.shape_cast %422 : vector<1x8x128xf32> to vector<8x128xf32>
    %424 = arith.addf %423, %415 : vector<8x128xf32>
    %c1_175 = arith.constant 1 : index
    %c0_176 = arith.constant 0 : index
    %c0_177 = arith.constant 0 : index
    %425 = vector.load %arg9[%c1_175, %c0_176, %c0_177] : memref<4x8x128xf32, #tpu.memory_space<vmem>>, vector<1x8x128xf32>
    %426 = vector.shape_cast %425 : vector<1x8x128xf32> to vector<8x128xf32>
    %427 = vector.shape_cast %424 : vector<8x128xf32> to vector<1x8x128xf32>
    tpu.vector_store %arg9[%c1_175, %c0_176, %c0_177], %427 {strides = array<i32>} : memref<4x8x128xf32, #tpu.memory_space<vmem>>, vector<1x8x128xf32>,
    %c2_178 = arith.constant 2 : index
    %c0_179 = arith.constant 0 : index
    %c0_180 = arith.constant 0 : index
    %428 = vector.load %arg9[%c2_178, %c0_179, %c0_180] : memref<4x8x128xf32, #tpu.memory_space<vmem>>, vector<1x8x128xf32>
    %429 = vector.shape_cast %428 : vector<1x8x128xf32> to vector<8x128xf32>
    %430 = arith.addf %429, %397 : vector<8x128xf32>
    %c2_181 = arith.constant 2 : index
    %c0_182 = arith.constant 0 : index
    %c0_183 = arith.constant 0 : index
    %431 = vector.load %arg9[%c2_181, %c0_182, %c0_183] : memref<4x8x128xf32, #tpu.memory_space<vmem>>, vector<1x8x128xf32>
    %432 = vector.shape_cast %431 : vector<1x8x128xf32> to vector<8x128xf32>
    %433 = vector.shape_cast %430 : vector<8x128xf32> to vector<1x8x128xf32>
    tpu.vector_store %arg9[%c2_181, %c0_182, %c0_183], %433 {strides = array<i32>} : memref<4x8x128xf32, #tpu.memory_space<vmem>>, vector<1x8x128xf32>,
    %c3_184 = arith.constant 3 : index
    %c0_185 = arith.constant 0 : index
    %c0_186 = arith.constant 0 : index
    %434 = vector.load %arg9[%c3_184, %c0_185, %c0_186] : memref<4x8x128xf32, #tpu.memory_space<vmem>>, vector<1x8x128xf32>
    %435 = vector.shape_cast %434 : vector<1x8x128xf32> to vector<8x128xf32>
    %436 = arith.addf %435, %403 : vector<8x128xf32>
    %c3_187 = arith.constant 3 : index
    %c0_188 = arith.constant 0 : index
    %c0_189 = arith.constant 0 : index
    %437 = vector.load %arg9[%c3_187, %c0_188, %c0_189] : memref<4x8x128xf32, #tpu.memory_space<vmem>>, vector<1x8x128xf32>
    %438 = vector.shape_cast %437 : vector<1x8x128xf32> to vector<8x128xf32>
    %439 = vector.shape_cast %436 : vector<8x128xf32> to vector<1x8x128xf32>
    tpu.vector_store %arg9[%c3_187, %c0_188, %c0_189], %439 {strides = array<i32>} : memref<4x8x128xf32, #tpu.memory_space<vmem>>, vector<1x8x128xf32>,
    %c3_i32_190 = arith.constant 3 : i32
    return
  }
  func.func @transform_0(%arg0: i32) -> i32 {
    %c0_i32 = arith.constant 0 : i32
    %c0_i32_0 = arith.constant 0 : i32
    return %c0_i32 : i32
  }
  func.func @transform_1(%arg0: i32) -> (i32, i32, i32) {
    %c0_i32 = arith.constant 0 : i32
    %c0_i32_0 = arith.constant 0 : i32
    %c0_i32_1 = arith.constant 0 : i32
    %c0_i32_2 = arith.constant 0 : i32
    return %c0_i32, %c0_i32_0, %c0_i32_1 : i32, i32, i32
  }
  func.func @transform_2(%arg0: i32) -> (i32, i32, i32) {
    %c0_i32 = arith.constant 0 : i32
    %c0_i32_0 = arith.constant 0 : i32
    %c0_i32_1 = arith.constant 0 : i32
    %c0_i32_2 = arith.constant 0 : i32
    return %c0_i32, %c0_i32_0, %c0_i32_1 : i32, i32, i32
  }
  func.func @transform_3(%arg0: i32) -> (i32, i32, i32) {
    %c0_i32 = arith.constant 0 : i32
    %c0_i32_0 = arith.constant 0 : i32
    %c0_i32_1 = arith.constant 0 : i32
    %c0_i32_2 = arith.constant 0 : i32
    return %c0_i32, %c0_i32_0, %c0_i32_1 : i32, i32, i32
  }
  func.func @transform_4(%arg0: i32) -> (i32, i32, i32) {
    %c0_i32 = arith.constant 0 : i32
    %c0_i32_0 = arith.constant 0 : i32
    %c0_i32_1 = arith.constant 0 : i32
    %c0_i32_2 = arith.constant 0 : i32
    return %c0_i32, %c0_i32_0, %c0_i32_1 : i32, i32, i32
  }
  func.func @transform_5(%arg0: i32) -> (i32, i32, i32) {
    %c0_i32 = arith.constant 0 : i32
    %c0_i32_0 = arith.constant 0 : i32
    %c0_i32_1 = arith.constant 0 : i32
    %c0_i32_2 = arith.constant 0 : i32
    return %c0_i32, %c0_i32_0, %c0_i32_1 : i32, i32, i32
  }
  func.func @transform_6(%arg0: i32) -> (i32, i32, i32) {
    %c0_i32 = arith.constant 0 : i32
    %c0_i32_0 = arith.constant 0 : i32
    %c0_i32_1 = arith.constant 0 : i32
    %c0_i32_2 = arith.constant 0 : i32
    return %c0_i32, %c0_i32_0, %c0_i32_1 : i32, i32, i32
  }
  func.func @transform_7(%arg0: i32) -> (i32, i32, i32) {
    %c0_i32 = arith.constant 0 : i32
    %c0_i32_0 = arith.constant 0 : i32
    %c0_i32_1 = arith.constant 0 : i32
    return %c0_i32, %arg0, %c0_i32_0 : i32, i32, i32
  }
  func.func @transform_8(%arg0: i32) -> (i32, i32, i32) {
    %c0_i32 = arith.constant 0 : i32
    %c0_i32_0 = arith.constant 0 : i32
    %c0_i32_1 = arith.constant 0 : i32
    return %c0_i32, %arg0, %c0_i32_0 : i32, i32, i32
  }
}

</mosaic_0001>

<bundles_post_ra>
// kernel: custom-call
= control target key start
LH: loop header
LB: loop body
LE: loop exit
PB: predicated region body
PF: predicated region fallthrough
CT: control target
= control target key end

     0   :  { %2 = vsyncpa [#allocation0], 0  ;;  %s55_s0 = inlined_call_operand.hbm [shape: c64[8,32], index: 0, kind: input, shape index: {}]   ;;  %s56_s1 = inlined_call_operand.vmem [shape: f32[8,32], index: 1, kind: output, shape index: {}]  }
   0x1   :  { %s4_s8 = sshll.u32 %s55_s0, 4  ;;  %s6_s11 = sshll.u32 %s56_s1, 4  ;;  %s5_s8 = int_to_ptr.hbm [resolvable:$true] %s4_s8  ;;  %s7_s11 = int_to_ptr.vmem [resolvable:$true] %s6_s11 }
   0x2   :  { %9 = dma.hbm_to_vmem [thread:$0]  %s5_s8, 128, %s7_s11, [#allocation0] }
   0x3   :  { %37 = dma.done.wait [#allocation0], 128  }
   0x4   :  { %38 = vsyncadd [#allocation0], 4294967168 }
   0x5   :  { %12 = vsyncpa [#allocation0], 1 }

// kernel: custom-call.1
= control target key start
LH: loop header
LB: loop body
LE: loop exit
PB: predicated region body
PF: predicated region fallthrough
CT: control target
= control target key end

     0   :  { %s56_s0 = inlined_call_operand.hbm [shape: c64[8,32], index: 0, kind: input, shape index: {}]   ;;  %s57_s1 = inlined_call_operand.vmem [shape: f32[8,32], index: 1, kind: output, shape index: {}]  }
   0x1   :  { %s2_s8 = scalar_lea.hbm %s56_s0, 8 }
   0x2   :  { %3 = vsyncpa [#allocation0], 0  ;;  %s5_s9 = sshll.u32 %s2_s8, 4  ;;  %s7_s12 = sshll.u32 %s57_s1, 4  ;;  %s6_s9 = int_to_ptr.hbm [resolvable:$true] %s5_s9  ;;  %s8_s12 = int_to_ptr.vmem [resolvable:$true] %s7_s12 }
   0x3   :  { %10 = dma.hbm_to_vmem [thread:$0]  %s6_s9, 128, %s8_s12, [#allocation0] }
   0x4   :  { %38 = dma.done.wait [#allocation0], 128  }
   0x5   :  { %39 = vsyncadd [#allocation0], 4294967168 }
   0x6   :  { %13 = vsyncpa [#allocation0], 1 }

// kernel: custom-call.5
= control target key start
LH: loop header
LB: loop body
LE: loop exit
PB: predicated region body
PF: predicated region fallthrough
CT: control target
= control target key end

     0   :  { %s105_s0 = inlined_call_operand.vmem [shape: f32[8,32], index: 0, kind: input, shape index: {}]   ;;  %s106_s1 = inlined_call_operand.vmem [shape: f32[8,32], index: 1, kind: input, shape index: {}]   ;;  %s107_s2 = inlined_call_operand.hbm [shape: c64[8,32], index: 2, kind: output, shape index: {}]  }
   0x1   :  { %s3_s11 = scalar_lea.hbm %s107_s2, 8 }
   0x2   :  { %4 = vsyncpa [#allocation0], 0  ;;  %s6_s14 = sshll.u32 %s105_s0, 4  ;;  %s8_s17 = sshll.u32 %s107_s2, 4  ;;  %s7_s14 = int_to_ptr.vmem [resolvable:$true] %s6_s14  ;;  %s9_s17 = int_to_ptr.hbm [resolvable:$true] %s8_s17 }
   0x3   :  { %11 = dma.vmem_to_hbm [thread:$0]  %s7_s14, 128, %s9_s17, [#allocation0] }
   0x4   :  { %74 = dma.done.wait [#allocation0], 128  }
   0x5   :  { %75 = vsyncadd [#allocation0], 4294967168 }
   0x6   :  { %14 = vsyncpa [#allocation0], 1 }
   0x7   :  { %15 = vsyncpa [#allocation1], 0  ;;  %s17_s20 = sshll.u32 %s106_s1, 4  ;;  %s19_s21 = sshll.u32 %s3_s11, 4  ;;  %s18_s20 = int_to_ptr.vmem [resolvable:$true] %s17_s20  ;;  %s20_s21 = int_to_ptr.hbm [resolvable:$true] %s19_s21 }
   0x8   :  { %22 = dma.vmem_to_hbm [thread:$0]  %s18_s20, 128, %s20_s21, [#allocation1] }
   0x9   :  { %76 = dma.done.wait [#allocation1], 128  }
   0xa   :  { %77 = vsyncadd [#allocation1], 4294967168 }
   0xb   :  { %25 = vsyncpa [#allocation1], 1 }

// kernel: complex_sympnet_forward.1
= control target key start
LH: loop header
LB: loop body
LE: loop exit
PB: predicated region body
PF: predicated region fallthrough
CT: control target
= control target key end

     0   :  { %13 = vsyncpa [#allocation5], 0  ;;  %s1810_s30 = smov [#allocation4]   ;;  %s2647_s0 = inlined_call_operand.vmem [shape: f32[12], index: 0, kind: input, shape index: {}]   ;;  %s2648_s1 = inlined_call_operand.vmem [shape: bf16[3,128,256], index: 1, kind: input, shape index: {}]   ;;  %s2649_s2 = inlined_call_operand.vmem [shape: bf16[3,128,256], index: 2, kind: input, shape index: {}]   ;;  %s2650_s3 = inlined_call_operand.vmem [shape: f32[3,1,128], index: 3, kind: input, shape index: {}]   ;;  %s2651_s4 = inlined_call_operand.vmem [shape: f32[3,1,128], index: 4, kind: input, shape index: {}]   ;;  %s2652_s5 = inlined_call_operand.vmem [shape: f32[3,1,128], index: 5, kind: input, shape index: {}]   ;;  %s2653_s6 = inlined_call_operand.vmem [shape: f32[3,1,128], index: 6, kind: input, shape index: {}]   ;;  %s2654_s7 = inlined_call_operand.vmem [shape: f32[4,8,128], index: 7, kind: input, shape index: {}]   ;;  %s2655_s8 = inlined_call_operand.vmem [shape: f32[4,8,128], index: 8, kind: output, shape index: {}]  }
   0x1   :  { %s19_s29 = sshll.u32 %s2647_s0, 4  ;;  %s20_s29 = int_to_ptr.vmem [resolvable:$true] %s19_s29 }
   0x2   :  { %22 = dma.vmem_to_smem %s20_s29, 16, %s1810_s30, [#allocation5]  }
   0x3   :  { %1808 = dma.done.wait [#allocation5], 16  }
   0x4   :  { %1809 = vsyncadd [#allocation5], 4294967280 }
   0x5   :  { %41 = sfence }
   0x6   :  { %v1191_v0 = vld [vmem:[%s2648_s1 + $0x70] sm:$0xf]  ;;  %v1651_v1 = vld [vmem:[%s2648_s1 + $0x74] sm:$0xf0]  ;;  %v1650_v2 = vld [vmem:[%s2648_s1 + $0x74] sm:$0xf] }
   0x7   :  { %v1192_v3 = vor.u32 %v1651_v1, %v1191_v0  ;;  %v1193_v4 = vld [vmem:[%s2648_s1 + $0x78] sm:$0xf0]  ;;  %v1183_v5 = vld [vmem:[%s2648_s1 + $0x60] sm:$0xf]  ;;  %v1649_v6 = vld [vmem:[%s2648_s1 + $0x64] sm:$0xf0] }
   0x8   :  { %v1196_v7 = vor.u32 %v1650_v2, %v1193_v4  ;;  %v1648_v8 = vld [vmem:[%s2648_s1 + $0x64] sm:$0xf]  ;;  %v1185_v9 = vld [vmem:[%s2648_s1 + $0x68] sm:$0xf0]  ;;  %v1184_v10 = vor.u32 %v1649_v6, %v1183_v5  ;;  %v1175_v12 = vld [vmem:[%s2648_s1 + $0x50] sm:$0xf] }
   0x9   :  { %186 = vmatpush.bf16.msra.mxu0 %v1192_v3  ;;  %v1188_v11 = vor.u32 %v1648_v8, %v1185_v9  ;;  %v1647_v13 = vld [vmem:[%s2648_s1 + $0x54] sm:$0xf0]  ;;  %v1646_v14 = vld [vmem:[%s2648_s1 + $0x54] sm:$0xf]  ;;  %v1177_v15 = vld [vmem:[%s2648_s1 + $0x58] sm:$0xf0] }
   0xa   :  { %200 = vmatpush.bf16.msra.mxu1 %v1196_v7  ;;  %v1176_v16 = vor.u32 %v1647_v13, %v1175_v12  ;;  %v1180_v17 = vor.u32 %v1646_v14, %v1177_v15  ;;  %v1167_v18 = vld [vmem:[%s2648_s1 + $0x40] sm:$0xf]  ;;  %v1645_v19 = vld [vmem:[%s2648_s1 + $0x44] sm:$0xf0]  ;;  %v1644_v20 = vld [vmem:[%s2648_s1 + $0x44] sm:$0xf] }
   0xb   :  { %v1169_v21 = vld [vmem:[%s2648_s1 + $0x48] sm:$0xf0]  ;;  %v1159_v22 = vld [vmem:[%s2648_s1 + $0x30] sm:$0xf]  ;;  %v1643_v23 = vld [vmem:[%s2648_s1 + $0x34] sm:$0xf0]  ;;  %v1168_v24 = vor.u32 %v1645_v19, %v1167_v18 }
   0xc   :  { %v1642_v25 = vld [vmem:[%s2648_s1 + $0x34] sm:$0xf]  ;;  %v1161_v26 = vld [vmem:[%s2648_s1 + $0x38] sm:$0xf0]  ;;  %s56_s25 = sld [smem:[#allocation4]]  ;;  %v1172_v27 = vor.u32 %v1644_v20, %v1169_v21  ;;  %v1160_v32 = vor.u32 %v1643_v23, %v1159_v22  ;;  %v1944_v36 = vld [vmem:[%s2654_s7] sm:$0xff] }
   0xd   :  { %187 = vmatpush.bf16.msra.mxu0 %v1184_v10  ;;  %s1126_s26 = sld [smem:[#allocation4 + $0x1]]  ;;  %v1922_v28 = vld [vmem:[%s2654_s7 + $0x10] sm:$0xff]  ;;  %v1927_v29 = vld [vmem:[%s2654_s7 + $0x18] sm:$0xff]  ;;  %v1151_v30 = vld [vmem:[%s2648_s1 + $0x20] sm:$0xf]  ;;  %v1164_v34 = vor.u32 %v1642_v25, %v1161_v26 }
   0xe   :  { %201 = vmatpush.bf16.msra.mxu1 %v1188_v11  ;;  %s1127_s9 = sld [smem:[#allocation4 + $0x2]]  ;;  %v1641_v31 = vld [vmem:[%s2648_s1 + $0x24] sm:$0xf0]  ;;  %v1640_v33 = vld [vmem:[%s2648_s1 + $0x24] sm:$0xf] }
   0xf   :  { %s1128_s14 = sld [smem:[#allocation4 + $0x3]]  ;;  %v1153_v35 = vld [vmem:[%s2648_s1 + $0x28] sm:$0xf0]  ;;  %v1152_v42 = vor.u32 %v1641_v31, %v1151_v30  ;;  %v1143_v47 = vld [vmem:[%s2648_s1 + $0x10] sm:$0xf] }
  0x10   :  { %v1949_v37 = vld [vmem:[%s2654_s7 + $0x8] sm:$0xff]  ;;  %v1156_v46 = vor.u32 %v1640_v33, %v1153_v35  ;;  %v1639_v48 = vld [vmem:[%s2648_s1 + $0x14] sm:$0xf0]  ;;  %v1638_v52 = vld [vmem:[%s2648_s1 + $0x14] sm:$0xf]  ;;  %s1271_s12 = sld [smem:[#allocation4 + $0x4]] }
  0x11   :  { %188 = vmatpush.bf16.msra.mxu0 %v1176_v16  ;;  %v1145_v53 = vld [vmem:[%s2648_s1 + $0x18] sm:$0xf0]  ;;  %v1144_v58 = vor.u32 %v1639_v48, %v1143_v47  ;;  %v1135_v62 = vld [vmem:[%s2648_s1] sm:$0xf]  ;;  %v1637_v63 = vld [vmem:[%s2648_s1 + $0x4] sm:$0xf0] }
  0x12   :  { %202 = vmatpush.bf16.msra.mxu1 %v1180_v17  ;;  %v1951_v38 = vstv %s56_s25  ;;  %v1148_v61 = vor.u32 %v1638_v52, %v1145_v53  ;;  %v1636_v0 = vld [vmem:[%s2648_s1 + $0x4] sm:$0xf]  ;;  %v1137_v1 = vld [vmem:[%s2648_s1 + $0x8] sm:$0xf0]  ;;  %v1136_v4 = vor.u32 %v1637_v63, %v1135_v62  ;;  %v1259_v8 = vld [vmem:[%s2649_s2 + $0x70] sm:$0xf] }
  0x13   :  { %v61_v39 = vmul.f32 %v1922_v28, %v1951_v38  ;;  %v1955_v40 = vstv %s1126_s26  ;;  %v71_v41 = vmul.f32 %v1927_v29, %v1951_v38  ;;  %v1140_v6 = vor.u32 %v1636_v0, %v1137_v1  ;;  %v1668_v9 = vld [vmem:[%s2649_s2 + $0x74] sm:$0xf0]  ;;  %v1667_v10 = vld [vmem:[%s2649_s2 + $0x74] sm:$0xf]  ;;  %v1261_v12 = vld [vmem:[%s2649_s2 + $0x78] sm:$0xf0] }
  0x14   :  { %v63_v43 = vmul.f32 %v1927_v29, %v1955_v40  ;;  %v1961_v44 = vstv %s1127_s9  ;;  %v72_v45 = vmul.f32 %v1922_v28, %v1955_v40  ;;  %v1260_v11 = vor.u32 %v1668_v9, %v1259_v8  ;;  %v1251_v13 = vld [vmem:[%s2649_s2 + $0x60] sm:$0xf]  ;;  %v1666_v14 = vld [vmem:[%s2649_s2 + $0x64] sm:$0xf0]  ;;  %v1665_v16 = vld [vmem:[%s2649_s2 + $0x64] sm:$0xf] }
  0x15   :  { %189 = vmatpush.bf16.msra.mxu0 %v1168_v24  ;;  %v66_v49 = vmul.f32 %v1961_v44, %v1944_v36  ;;  %v1973_v50 = vstv %s1128_s14  ;;  %v74_v51 = vmul.f32 %v1949_v37, %v1961_v44  ;;  %v1264_v15 = vor.u32 %v1667_v10, %v1261_v12  ;;  %v1253_v17 = vld [vmem:[%s2649_s2 + $0x68] sm:$0xf0]  ;;  %v1243_v20 = vld [vmem:[%s2649_s2 + $0x50] sm:$0xf]  ;;  %v1664_v21 = vld [vmem:[%s2649_s2 + $0x54] sm:$0xf0] }
  0x16   :  { %203 = vmatpush.bf16.msra.mxu1 %v1172_v27  ;;  %v64_v54 = vsub.f32 %v61_v39, %v63_v43  ;;  %v68_v55 = vmul.f32 %v1949_v37, %v1973_v50  ;;  %v73_v56 = vadd.f32 %v72_v45, %v71_v41  ;;  %v75_v57 = vmul.f32 %v1973_v50, %v1944_v36  ;;  %v1663_v22 = vld [vmem:[%s2649_s2 + $0x54] sm:$0xf]  ;;  %v1245_v24 = vld [vmem:[%s2649_s2 + $0x58] sm:$0xf0]  ;;  %v1235_v26 = vld [vmem:[%s2649_s2 + $0x40] sm:$0xf] }
  0x17   :  { %342 = vmatpush.bf16.msra.mxu2 %v1260_v11  ;;  %v1252_v18 = vor.u32 %v1666_v14, %v1251_v13  ;;  %356 = vmatpush.bf16.msra.mxu3 %v1264_v15  ;;  %v1256_v19 = vor.u32 %v1665_v16, %v1253_v17  ;;  %v1244_v23 = vor.u32 %v1664_v21, %v1243_v20  ;;  %v1662_v27 = vld [vmem:[%s2649_s2 + $0x44] sm:$0xf0]  ;;  %v1661_v30 = vld [vmem:[%s2649_s2 + $0x44] sm:$0xf]  ;;  %v1660_v35 = vld [vmem:[%s2649_s2 + $0x34] sm:$0xf0] }
  0x18   :  { %v69_v59 = vsub.f32 %v66_v49, %v68_v55  ;;  %v76_v60 = vadd.f32 %v75_v57, %v74_v51  ;;  %v1248_v25 = vor.u32 %v1663_v22, %v1245_v24  ;;  %v1236_v31 = vor.u32 %v1662_v27, %v1235_v26  ;;  %v1659_v39 = vld [vmem:[%s2649_s2 + $0x34] sm:$0xf]  ;;  %v1219_v45 = vld [vmem:[%s2649_s2 + $0x20] sm:$0xf]  ;;  %v1657_v47 = vld [vmem:[%s2649_s2 + $0x24] sm:$0xf] }
  0x19   :  { %190 = vmatpush.bf16.msra.mxu0 %v1160_v32  ;;  %v1237_v32 = vld [vmem:[%s2649_s2 + $0x48] sm:$0xf0]  ;;  %v1211_v52 = vld [vmem:[%s2649_s2 + $0x10] sm:$0xf]  ;;  %v1656_v53 = vld [vmem:[%s2649_s2 + $0x14] sm:$0xf0] }
  0x1a   :  { %204 = vmatpush.bf16.msra.mxu1 %v1164_v34  ;;  %v70_v2 = vadd.f32 %v69_v59, %v64_v54  ;;  %v77_v3 = vadd.f32 %v76_v60, %v73_v56  ;;  %v1240_v33 = vor.u32 %v1661_v30, %v1237_v32  ;;  %v1227_v34 = vld [vmem:[%s2649_s2 + $0x30] sm:$0xf]  ;;  %v1221_v49 = vld [vmem:[%s2649_s2 + $0x28] sm:$0xf0]  ;;  %v1655_v54 = vld [vmem:[%s2649_s2 + $0x14] sm:$0xf]  ;;  %v1212_v55 = vor.u32 %v1656_v53, %v1211_v52 }
  0x1b   :  { %343 = vmatpush.bf16.msra.mxu2 %v1252_v18  ;;  %357 = vmatpush.bf16.msra.mxu3 %v1256_v19  ;;  %v1228_v41 = vor.u32 %v1660_v35, %v1227_v34  ;;  %v1224_v51 = vor.u32 %v1657_v47, %v1221_v49  ;;  %v1213_v56 = vld [vmem:[%s2649_s2 + $0x18] sm:$0xf0]  ;;  %v1203_v57 = vld [vmem:[%s2649_s2] sm:$0xf]  ;;  %v1653_v60 = vld [vmem:[%s2649_s2 + $0x4] sm:$0xf] }
  0x1c   :  { %v1740_v5 = vpack.c.bf16 %v77_v3, %v70_v2  ;;  %v1216_v59 = vor.u32 %v1655_v54, %v1213_v56  ;;  %v1768_v2 = vld [vmem:[%s2651_s4] ss:$0 sm:$0xff]  ;;  %v1353_v17 = vld [vmem:[%s2648_s1 + $0xf0] sm:$0xf]  ;;  %v1685_v18 = vld [vmem:[%s2648_s1 + $0xf4] sm:$0xf0] }
  0x1d   :  { %191 = vmatpush.bf16.msra.mxu0 %v1152_v42  ;;  %v1229_v42 = vld [vmem:[%s2649_s2 + $0x38] sm:$0xf0]  ;;  %v1770_v3 = vld [vmem:[%s2650_s3] ss:$0 sm:$0xff]  ;;  %v1684_v19 = vld [vmem:[%s2648_s1 + $0xf4] sm:$0xf]  ;;  %v1354_v20 = vor.u32 %v1685_v18, %v1353_v17 }
  0x1e   :  { %205 = vmatpush.bf16.msra.mxu1 %v1156_v46  ;;  %1741 = vst [vmem:[#allocation2] sm:$0xff] %v1740_v5   ;;  %v1232_v43 = vor.u32 %v1659_v39, %v1229_v42  ;;  %v1658_v46 = vld [vmem:[%s2649_s2 + $0x24] sm:$0xf0]  ;;  %v1769_v10 = vld [vmem:[%s2652_s5] ss:$0 sm:$0xff]  ;;  %s1272_s13 = sld [smem:[#allocation4 + $0x5]] }
  0x1f   :  { %344 = vmatpush.bf16.msra.mxu2 %v1244_v23  ;;  %358 = vmatpush.bf16.msra.mxu3 %v1248_v25  ;;  %v1220_v48 = vor.u32 %v1658_v46, %v1219_v45  ;;  %v1355_v21 = vld [vmem:[%s2648_s1 + $0xf8] sm:$0xf0]  ;;  %v1345_v23 = vld [vmem:[%s2648_s1 + $0xe0] sm:$0xf]  ;;  %v1683_v24 = vld [vmem:[%s2648_s1 + $0xe4] sm:$0xf0] }
  0x20   :  { %v1358_v22 = vor.u32 %v1684_v19, %v1355_v21  ;;  %v1682_v25 = vld [vmem:[%s2648_s1 + $0xe4] sm:$0xf]  ;;  %v1346_v26 = vor.u32 %v1683_v24, %v1345_v23  ;;  %v1347_v27 = vld [vmem:[%s2648_s1 + $0xe8] sm:$0xf0]  ;;  %v1681_v32 = vld [vmem:[%s2648_s1 + $0xd4] sm:$0xf0] }
  0x21   :  { %192 = vmatpush.bf16.msra.mxu0 %v1144_v58  ;;  %v1654_v58 = vld [vmem:[%s2649_s2 + $0x4] sm:$0xf0]  ;;  %v1350_v30 = vor.u32 %v1682_v25, %v1347_v27  ;;  %v1339_v35 = vld [vmem:[%s2648_s1 + $0xd8] sm:$0xf0]  ;;  %v1331_v46 = vld [vmem:[%s2648_s1 + $0xc8] sm:$0xf0] }
  0x22   :  { %206 = vmatpush.bf16.msra.mxu1 %v1148_v61  ;;  %v1205_v61 = vld [vmem:[%s2649_s2 + $0x8] sm:$0xf0]  ;;  %v1204_v62 = vor.u32 %v1654_v58, %v1203_v57  ;;  %v1679_v42 = vld [vmem:[%s2648_s1 + $0xc4] sm:$0xf0]  ;;  %v1677_v49 = vld [vmem:[%s2648_s1 + $0xb4] sm:$0xf0] }
  0x23   :  { %345 = vmatpush.bf16.msra.mxu2 %v1236_v31  ;;  %359 = vmatpush.bf16.msra.mxu3 %v1240_v33  ;;  %v1208_v63 = vor.u32 %v1653_v60, %v1205_v61  ;;  %v1337_v31 = vld [vmem:[%s2648_s1 + $0xd0] sm:$0xf]  ;;  %v1680_v33 = vld [vmem:[%s2648_s1 + $0xd4] sm:$0xf]  ;;  %v1323_v53 = vld [vmem:[%s2648_s1 + $0xb8] sm:$0xf0] }
  0x24   :  { %v1338_v34 = vor.u32 %v1681_v32, %v1337_v31  ;;  %v1342_v39 = vor.u32 %v1680_v33, %v1339_v35  ;;  %v1675_v56 = vld [vmem:[%s2648_s1 + $0xa4] sm:$0xf0]  ;;  %v1674_v57 = vld [vmem:[%s2648_s1 + $0xa4] sm:$0xf]  ;;  %v1305_v61 = vld [vmem:[%s2648_s1 + $0x90] sm:$0xf]  ;;  %v2211_v31 = vstv %s1271_s12 }
  0x25   :  { %193 = vmatpush.bf16.msra.mxu0 %v1136_v4  ;;  %v1635_v7 = vld [vmem:[#allocation2] sm:$0xff]  ;;  %s1273_s15 = sld [smem:[#allocation4 + $0x6]]  ;;  %v2213_v32 = vstv %s1272_s13 }
  0x26   :  { %207 = vmatpush.bf16.msra.mxu1 %v1140_v6  ;;  %s1274_s16 = sld [smem:[#allocation4 + $0x7]] }
  0x27   :  { %346 = vmatpush.bf16.msra.mxu2 %v1228_v41  ;;  %360 = vmatpush.bf16.msra.mxu3 %v1232_v43  ;;  %v1329_v41 = vld [vmem:[%s2648_s1 + $0xc0] sm:$0xf]  ;;  %v1678_v43 = vld [vmem:[%s2648_s1 + $0xc4] sm:$0xf]  ;;  %s1453_s14 = sld [smem:[#allocation4 + $0x8]] }
  0x28   :  { %194 = vmatmul.bf16.vlgmr.msra.gmra.mxu0 %v1635_v7  ;;  %v1330_v45 = vor.u32 %v1679_v42, %v1329_v41  ;;  %v1334_v47 = vor.u32 %v1678_v43, %v1331_v46  ;;  %s1454_s0 = sld [smem:[#allocation4 + $0x9]] }
  0x29   :  { %208 = vmatmul.bf16.vlgmr.msra.gmra.mxu1 %v1635_v7  ;;  %536 = vmatpush.bf16.msrb.mxu0 %v1354_v20  ;;  %s1455_s17 = sld [smem:[#allocation4 + $0xa]] }
  0x2a   :  { %550 = vmatpush.bf16.msrb.mxu1 %v1358_v22  ;;  %s1456_s18 = sld [smem:[#allocation4 + $0xb]] }
  0x2b   :  { %347 = vmatpush.bf16.msra.mxu2 %v1220_v48  ;;  %361 = vmatpush.bf16.msra.mxu3 %v1224_v51  ;;  %v1321_v48 = vld [vmem:[%s2648_s1 + $0xb0] sm:$0xf]  ;;  %v1676_v51 = vld [vmem:[%s2648_s1 + $0xb4] sm:$0xf]  ;;  %v2215_v33 = vstv %s1273_s15 }
  0x2c   :  { %v1322_v52 = vor.u32 %v1677_v49, %v1321_v48  ;;  %v1326_v54 = vor.u32 %v1676_v51, %v1323_v53  ;;  %v1440_v53 = vld [vmem:[%s2649_s2 + $0xf0] sm:$0xf] }
  0x2d   :  { %537 = vmatpush.bf16.msrb.mxu0 %v1346_v26 }
  0x2e   :  { %551 = vmatpush.bf16.msrb.mxu1 %v1350_v30 }
  0x2f   :  { %348 = vmatpush.bf16.msra.mxu2 %v1212_v55  ;;  %362 = vmatpush.bf16.msra.mxu3 %v1216_v59  ;;  %v1313_v55 = vld [vmem:[%s2648_s1 + $0xa0] sm:$0xf]  ;;  %v1315_v59 = vld [vmem:[%s2648_s1 + $0xa8] sm:$0xf0] }
  0x30   :  { %v1314_v58 = vor.u32 %v1675_v56, %v1313_v55  ;;  %v1318_v60 = vor.u32 %v1674_v57, %v1315_v59  ;;  %v1701_v55 = vld [vmem:[%s2649_s2 + $0xf4] sm:$0xf]  ;;  %v1442_v57 = vld [vmem:[%s2649_s2 + $0xf8] sm:$0xf0]  ;;  %v1700_v59 = vld [vmem:[%s2649_s2 + $0xe4] sm:$0xf0] }
  0x31   :  { %538 = vmatpush.bf16.msrb.mxu0 %v1338_v34  ;;  %v2217_v34 = vstv %s1274_s16 }
  0x32   :  { %552 = vmatpush.bf16.msrb.mxu1 %v1342_v39 }
  0x33   :  { %349 = vmatpush.bf16.msra.mxu2 %v1204_v62  ;;  %363 = vmatpush.bf16.msra.mxu3 %v1208_v63  ;;  %v1673_v62 = vld [vmem:[%s2648_s1 + $0x94] sm:$0xf0]  ;;  %v1672_v63 = vld [vmem:[%s2648_s1 + $0x94] sm:$0xf] }
  0x35   :  { %539 = vmatpush.bf16.msrb.mxu0 %v1330_v45 }
  0x36   :  { %553 = vmatpush.bf16.msrb.mxu1 %v1334_v47 }
  0x39   :  { %540 = vmatpush.bf16.msrb.mxu0 %v1322_v52 }
  0x3a   :  { %554 = vmatpush.bf16.msrb.mxu1 %v1326_v54  ;;  %v1702_v54 = vld [vmem:[%s2649_s2 + $0xf4] sm:$0xf0] }
  0x3b   :  { %v1441_v56 = vor.u32 %v1702_v54, %v1440_v53 }
  0x3d   :  { %541 = vmatpush.bf16.msrb.mxu0 %v1314_v58  ;;  %v1432_v58 = vld [vmem:[%s2649_s2 + $0xe0] sm:$0xf]  ;;  %696 = vmatpush.bf16.msrb.mxu2 %v1441_v56 }
  0x3e   :  { %555 = vmatpush.bf16.msrb.mxu1 %v1318_v60  ;;  %v1445_v60 = vor.u32 %v1701_v55, %v1442_v57  ;;  %v1773_v55 = vld [vmem:[%s2652_s5 + $0x1] ss:$0 sm:$0xff] }
  0x40   :  { %710 = vmatpush.bf16.msrb.mxu3 %v1445_v60 }
  0xa5   :  { %v195_v0 = vpop.f32.mrf.mxu0 }
  0xa6   :  { %v209_v1 = vpop.f32.mrf.mxu1 }
  0xad   :  { %v197_v4 = vpop.f32.mrf.mxu0 }
  0xae   :  { %v211_v5 = vpop.f32.mrf.mxu1  ;;  %v222_v6 = vadd.f32 %v209_v1, %v197_v4  ;;  %v1307_v1 = vld [vmem:[%s2648_s1 + $0x98] sm:$0xf0] }
  0xaf   :  { %v216_v7 = vsub.f32 %v195_v0, %v211_v5  ;;  %v1306_v0 = vor.u32 %v1673_v62, %v1305_v61  ;;  %v1310_v4 = vor.u32 %v1672_v63, %v1307_v1  ;;  %v1670_v5 = vld [vmem:[%s2648_s1 + $0x84] sm:$0xf]  ;;  %v1434_v62 = vld [vmem:[%s2649_s2 + $0xe8] sm:$0xf0]  ;;  %v1433_v63 = vor.u32 %v1700_v59, %v1432_v58  ;;  %v1424_v1 = vld [vmem:[%s2649_s2 + $0xd0] sm:$0xf] }
  0xb0   :  { %v226_v8 = vadd.f32 %v1768_v2, %v222_v6  ;;  %v1297_v2 = vld [vmem:[%s2648_s1 + $0x80] sm:$0xf]  ;;  %v1299_v6 = vld [vmem:[%s2648_s1 + $0x88] sm:$0xf0]  ;;  %v1699_v61 = vld [vmem:[%s2649_s2 + $0xe4] sm:$0xf] }
  0xb1   :  { %v220_v9 = vadd.f32 %v1770_v3, %v216_v7  ;;  %v1671_v3 = vld [vmem:[%s2648_s1 + $0x84] sm:$0xf0]  ;;  %542 = vmatpush.bf16.msrb.mxu0 %v1306_v0  ;;  %556 = vmatpush.bf16.msrb.mxu1 %v1310_v4  ;;  %v1437_v0 = vor.u32 %v1699_v61, %v1434_v62  ;;  %v1535_v62 = vld [vmem:[%s2648_s1 + $0x170] sm:$0xf] }
  0xb2   :  { %1780 = vtanh.f32 %v226_v8  ;;  %v1298_v7 = vor.u32 %v1671_v3, %v1297_v2  ;;  %697 = vmatpush.bf16.msrb.mxu2 %v1433_v63  ;;  %v1698_v2 = vld [vmem:[%s2649_s2 + $0xd4] sm:$0xf0]  ;;  %v1697_v3 = vld [vmem:[%s2649_s2 + $0xd4] sm:$0xf] }
  0xb3   :  { %1782 = vtanh.f32 %v220_v9  ;;  %711 = vmatpush.bf16.msrb.mxu3 %v1437_v0  ;;  %v1425_v4 = vor.u32 %v1698_v2, %v1424_v1  ;;  %v1719_v63 = vld [vmem:[%s2648_s1 + $0x174] sm:$0xf0]  ;;  %v1718_v0 = vld [vmem:[%s2648_s1 + $0x174] sm:$0xf]  ;;  %v1537_v2 = vld [vmem:[%s2648_s1 + $0x178] sm:$0xf0] }
  0xb4   :  { %v1536_v1 = vor.u32 %v1719_v63, %v1535_v62 }
  0xb5   :  { %543 = vmatpush.bf16.msrb.mxu0 %v1298_v7  ;;  %v1416_v7 = vld [vmem:[%s2649_s2 + $0xc0] sm:$0xf] }
  0xb6   :  { %698 = vmatpush.bf16.msrb.mxu2 %v1425_v4  ;;  %v1527_v4 = vld [vmem:[%s2648_s1 + $0x160] sm:$0xf] }
  0xb8   :  { %v1781_v11 = vpop.eup %1780 }
  0xb9   :  { %v1783_v12 = vpop.eup %1782  ;;  %v235_v13 = vmul.f32 %v1781_v11, %v1769_v10  ;;  %v1771_v11 = vld [vmem:[%s2653_s6] ss:$0 sm:$0xff]  ;;  %891 = vmatpush.bf16.msra.mxu0 %v1536_v1 }
  0xba   :  { %v232_v14 = vmul.f32 %v1783_v12, %v1769_v10  ;;  %v1302_v10 = vor.u32 %v1670_v5, %v1299_v6  ;;  %v1426_v5 = vld [vmem:[%s2649_s2 + $0xd8] sm:$0xf0] }
  0xbb   :  { %v1429_v6 = vor.u32 %v1697_v3, %v1426_v5  ;;  %v1540_v3 = vor.u32 %v1718_v0, %v1537_v2  ;;  %v1717_v5 = vld [vmem:[%s2648_s1 + $0x164] sm:$0xf0] }
  0xbc   :  { %v1745_v15 = vpack.c.bf16 %v235_v13, %v232_v14  ;;  %557 = vmatpush.bf16.msrb.mxu1 %v1302_v10 }
  0xbd   :  { %712 = vmatpush.bf16.msrb.mxu3 %v1429_v6  ;;  %v1716_v6 = vld [vmem:[%s2648_s1 + $0x164] sm:$0xf] }
  0xbe   :  { %1746 = vst [vmem:[#allocation3] sm:$0xff] %v1745_v15  }
  0xc0   :  { %905 = vmatpush.bf16.msra.mxu1 %v1540_v3 }
  0xc5   :  { %v1652_v16 = vld [vmem:[#allocation3] sm:$0xff] }
  0xc6   :  { %350 = vmatmul.bf16.vlgmr.msra.gmra.mxu2 %v1652_v16  ;;  %364 = vmatmul.bf16.vlgmr.msra.gmra.mxu3 %v1652_v16 }
 0x149   :  { %v351_v8 = vpop.f32.mrf.mxu2  ;;  %v365_v9 = vpop.f32.mrf.mxu3 }
 0x151   :  { %v353_v12 = vpop.f32.mrf.mxu2  ;;  %v367_v13 = vpop.f32.mrf.mxu3 }
 0x152   :  { %v371_v14 = vadd.f32 %v365_v9, %v353_v12  ;;  %v370_v15 = vsub.f32 %v351_v8, %v367_v13  ;;  %v1696_v8 = vld [vmem:[%s2649_s2 + $0xc4] sm:$0xf0]  ;;  %v1695_v9 = vld [vmem:[%s2649_s2 + $0xc4] sm:$0xf]  ;;  %v1408_v13 = vld [vmem:[%s2649_s2 + $0xb0] sm:$0xf] }
 0x153   :  { %v1417_v10 = vor.u32 %v1696_v8, %v1416_v7  ;;  %v1528_v7 = vor.u32 %v1717_v5, %v1527_v4  ;;  %v1529_v8 = vld [vmem:[%s2648_s1 + $0x168] sm:$0xf0] }
 0x154   :  { %v376_v16 = vadd.f32 %v1771_v11, %v371_v14  ;;  %v377_v17 = vmul.f32 %v370_v15, %v1961_v44  ;;  %v382_v18 = vmul.f32 %v370_v15, %v1973_v50  ;;  %v385_v19 = vmul.f32 %v370_v15, %v1951_v38  ;;  %v1418_v11 = vld [vmem:[%s2649_s2 + $0xc8] sm:$0xf0]  ;;  %v1694_v14 = vld [vmem:[%s2649_s2 + $0xb4] sm:$0xf0] }
 0x155   :  { %v390_v20 = vmul.f32 %v370_v15, %v1955_v40  ;;  %v1421_v12 = vor.u32 %v1695_v9, %v1418_v11  ;;  %699 = vmatpush.bf16.msrb.mxu2 %v1417_v10  ;;  %v1693_v15 = vld [vmem:[%s2649_s2 + $0xb4] sm:$0xf]  ;;  %v1532_v9 = vor.u32 %v1716_v6, %v1529_v8  ;;  %892 = vmatpush.bf16.msra.mxu0 %v1528_v7  ;;  %v1519_v10 = vld [vmem:[%s2648_s1 + $0x150] sm:$0xf]  ;;  %v1715_v11 = vld [vmem:[%s2648_s1 + $0x154] sm:$0xf0] }
 0x156   :  { %v378_v21 = vmul.f32 %v376_v16, %v1973_v50  ;;  %v381_v22 = vmul.f32 %v376_v16, %v1961_v44  ;;  %v386_v23 = vmul.f32 %v376_v16, %v1955_v40  ;;  %v389_v24 = vmul.f32 %v376_v16, %v1951_v38 }
 0x157   :  { %713 = vmatpush.bf16.msrb.mxu3 %v1421_v12  ;;  %v1409_v16 = vor.u32 %v1694_v14, %v1408_v13  ;;  %906 = vmatpush.bf16.msra.mxu1 %v1532_v9  ;;  %v1714_v12 = vld [vmem:[%s2648_s1 + $0x154] sm:$0xf]  ;;  %v1520_v13 = vor.u32 %v1715_v11, %v1519_v10  ;;  %v1521_v14 = vld [vmem:[%s2648_s1 + $0x158] sm:$0xf0]  ;;  %v2459_v10 = vstv %s1453_s14  ;;  %v2461_v11 = vstv %s1454_s0 }
 0x158   :  { %v379_v25 = vsub.f32 %v377_v17, %v378_v21  ;;  %v383_v26 = vadd.f32 %v382_v18, %v381_v22  ;;  %v387_v27 = vsub.f32 %v385_v19, %v386_v23  ;;  %v391_v30 = vadd.f32 %v390_v20, %v389_v24  ;;  %v1410_v17 = vld [vmem:[%s2649_s2 + $0xb8] sm:$0xf0]  ;;  %v1400_v19 = vld [vmem:[%s2649_s2 + $0xa0] sm:$0xf]  ;;  %v1692_v20 = vld [vmem:[%s2649_s2 + $0xa4] sm:$0xf0] }
 0x159   :  { %v1413_v18 = vor.u32 %v1693_v15, %v1410_v17  ;;  %700 = vmatpush.bf16.msrb.mxu2 %v1409_v16  ;;  %v1691_v21 = vld [vmem:[%s2649_s2 + $0xa4] sm:$0xf]  ;;  %v1401_v22 = vor.u32 %v1692_v20, %v1400_v19  ;;  %v1402_v23 = vld [vmem:[%s2649_s2 + $0xa8] sm:$0xf0]  ;;  %v1524_v15 = vor.u32 %v1714_v12, %v1521_v14  ;;  %893 = vmatpush.bf16.msra.mxu0 %v1520_v13  ;;  %v1511_v16 = vld [vmem:[%s2648_s1 + $0x140] sm:$0xf]  ;;  %v2463_v12 = vstv %s1455_s17 }
 0x15a   :  { %v2220_v50 = vadd.f32 %v1922_v28, %v379_v25  ;;  %v2223_v44 = vadd.f32 %v1927_v29, %v383_v26  ;;  %v2226_v38 = vsub.f32 %v1944_v36, %v387_v27  ;;  %v2229_v40 = vsub.f32 %v1949_v37, %v391_v30  ;;  %v1392_v25 = vld [vmem:[%s2649_s2 + $0x90] sm:$0xf]  ;;  %v1690_v26 = vld [vmem:[%s2649_s2 + $0x94] sm:$0xf0]  ;;  %v1689_v27 = vld [vmem:[%s2649_s2 + $0x94] sm:$0xf] }
 0x15b   :  { %714 = vmatpush.bf16.msrb.mxu3 %v1413_v18  ;;  %v1405_v24 = vor.u32 %v1691_v21, %v1402_v23  ;;  %v1393_v30 = vor.u32 %v1690_v26, %v1392_v25  ;;  %907 = vmatpush.bf16.msra.mxu1 %v1524_v15  ;;  %v1713_v17 = vld [vmem:[%s2648_s1 + $0x144] sm:$0xf0]  ;;  %v1712_v18 = vld [vmem:[%s2648_s1 + $0x144] sm:$0xf]  ;;  %v1513_v20 = vld [vmem:[%s2648_s1 + $0x148] sm:$0xf0]  ;;  %v2465_v13 = vstv %s1456_s18 }
 0x15c   :  { %v410_v35 = vmul.f32 %v2211_v31, %v2220_v50  ;;  %v412_v39 = vmul.f32 %v2213_v32, %v2223_v44  ;;  %v415_v41 = vmul.f32 %v2215_v33, %v2226_v38  ;;  %v417_v28 = vmul.f32 %v2217_v34, %v2229_v40  ;;  %v1711_v23 = vld [vmem:[%s2648_s1 + $0x134] sm:$0xf0]  ;;  %v1505_v26 = vld [vmem:[%s2648_s1 + $0x138] sm:$0xf0] }
 0x15d   :  { %v420_v29 = vmul.f32 %v2211_v31, %v2223_v44  ;;  %v421_v36 = vmul.f32 %v2213_v32, %v2220_v50  ;;  %v423_v37 = vmul.f32 %v2215_v33, %v2229_v40  ;;  %v424_v42 = vmul.f32 %v2217_v34, %v2226_v38  ;;  %701 = vmatpush.bf16.msrb.mxu2 %v1401_v22  ;;  %v1503_v22 = vld [vmem:[%s2648_s1 + $0x130] sm:$0xf] }
 0x15e   :  { %v413_v43 = vsub.f32 %v410_v35, %v412_v39  ;;  %v418_v45 = vsub.f32 %v415_v41, %v417_v28  ;;  %v1394_v35 = vld [vmem:[%s2649_s2 + $0x98] sm:$0xf0]  ;;  %v1384_v39 = vld [vmem:[%s2649_s2 + $0x80] sm:$0xf]  ;;  %v1688_v41 = vld [vmem:[%s2649_s2 + $0x84] sm:$0xf0]  ;;  %v1512_v19 = vor.u32 %v1713_v17, %v1511_v16  ;;  %v1516_v21 = vor.u32 %v1712_v18, %v1513_v20 }
 0x15f   :  { %v422_v46 = vadd.f32 %v421_v36, %v420_v29  ;;  %v425_v47 = vadd.f32 %v424_v42, %v423_v37  ;;  %715 = vmatpush.bf16.msrb.mxu3 %v1405_v24  ;;  %v1397_v28 = vor.u32 %v1689_v27, %v1394_v35  ;;  %v1687_v29 = vld [vmem:[%s2649_s2 + $0x84] sm:$0xf]  ;;  %v1386_v36 = vld [vmem:[%s2649_s2 + $0x88] sm:$0xf0]  ;;  %v1385_v37 = vor.u32 %v1688_v41, %v1384_v39  ;;  %v1710_v24 = vld [vmem:[%s2648_s1 + $0x134] sm:$0xf] }
 0x160   :  { %v419_v48 = vadd.f32 %v418_v45, %v413_v43  ;;  %v1389_v42 = vor.u32 %v1687_v29, %v1386_v36  ;;  %894 = vmatpush.bf16.msra.mxu0 %v1512_v19  ;;  %908 = vmatpush.bf16.msra.mxu1 %v1516_v21  ;;  %v1504_v25 = vor.u32 %v1711_v23, %v1503_v22  ;;  %v1709_v35 = vld [vmem:[%s2648_s1 + $0x124] sm:$0xf0]  ;;  %v1708_v39 = vld [vmem:[%s2648_s1 + $0x124] sm:$0xf]  ;;  %v1487_v36 = vld [vmem:[%s2648_s1 + $0x110] sm:$0xf] }
 0x161   :  { %v426_v49 = vadd.f32 %v425_v47, %v422_v46  ;;  %702 = vmatpush.bf16.msrb.mxu2 %v1393_v30  ;;  %v1772_v46 = vld [vmem:[%s2651_s4 + $0x1] ss:$0 sm:$0xff]  ;;  %v1508_v27 = vor.u32 %v1710_v24, %v1505_v26 }
 0x162   :  { %v1774_v47 = vld [vmem:[%s2650_s3 + $0x1] ss:$0 sm:$0xff] }
 0x163   :  { %v1750_v51 = vpack.c.bf16 %v426_v49, %v419_v48  ;;  %716 = vmatpush.bf16.msrb.mxu3 %v1397_v28  ;;  %v1495_v30 = vld [vmem:[%s2648_s1 + $0x120] sm:$0xf]  ;;  %v1497_v28 = vld [vmem:[%s2648_s1 + $0x128] sm:$0xf0] }
 0x164   :  { %895 = vmatpush.bf16.msra.mxu0 %v1504_v25  ;;  %909 = vmatpush.bf16.msra.mxu1 %v1508_v27  ;;  %v1496_v41 = vor.u32 %v1709_v35, %v1495_v30  ;;  %v1500_v29 = vor.u32 %v1708_v39, %v1497_v28  ;;  %v1622_v39 = vld [vmem:[%s2649_s2 + $0x170] sm:$0xf]  ;;  %v1735_v28 = vld [vmem:[%s2649_s2 + $0x174] sm:$0xf] }
 0x165   :  { %1751 = vst [vmem:[#allocation2] sm:$0xff] %v1750_v51   ;;  %703 = vmatpush.bf16.msrb.mxu2 %v1385_v37  ;;  %v1707_v37 = vld [vmem:[%s2648_s1 + $0x114] sm:$0xf0] }
 0x167   :  { %717 = vmatpush.bf16.msrb.mxu3 %v1389_v42  ;;  %v1706_v42 = vld [vmem:[%s2648_s1 + $0x114] sm:$0xf] }
 0x168   :  { %896 = vmatpush.bf16.msra.mxu0 %v1496_v41  ;;  %910 = vmatpush.bf16.msra.mxu1 %v1500_v29  ;;  %v1736_v41 = vld [vmem:[%s2649_s2 + $0x174] sm:$0xf0] }
 0x169   :  { %v1623_v29 = vor.u32 %v1736_v41, %v1622_v39 }
 0x16b   :  { %1051 = vmatpush.bf16.msra.mxu2 %v1623_v29 }
 0x16c   :  { %v1669_v52 = vld [vmem:[#allocation2] sm:$0xff] }
 0x16d   :  { %544 = vmatmul.bf16.vlgmr.msrb.gmra.mxu0 %v1669_v52  ;;  %558 = vmatmul.bf16.vlgmr.msrb.gmra.mxu1 %v1669_v52 }
 0x1ea   :  { %v545_v43 = vpop.f32.mrf.mxu0  ;;  %v559_v45 = vpop.f32.mrf.mxu1 }
 0x1f2   :  { %v547_v48 = vpop.f32.mrf.mxu0  ;;  %v561_v49 = vpop.f32.mrf.mxu1 }
 0x1f3   :  { %v574_v51 = vadd.f32 %v559_v45, %v547_v48  ;;  %v568_v52 = vsub.f32 %v545_v43, %v561_v49  ;;  %v1488_v43 = vor.u32 %v1707_v37, %v1487_v36  ;;  %v1489_v45 = vld [vmem:[%s2648_s1 + $0x118] sm:$0xf0]  ;;  %v1704_v49 = vld [vmem:[%s2648_s1 + $0x104] sm:$0xf]  ;;  %v1614_v37 = vld [vmem:[%s2649_s2 + $0x160] sm:$0xf] }
 0x1f4   :  { %v1492_v48 = vor.u32 %v1706_v42, %v1489_v45  ;;  %v1624_v36 = vld [vmem:[%s2649_s2 + $0x178] sm:$0xf0]  ;;  %v1734_v42 = vld [vmem:[%s2649_s2 + $0x164] sm:$0xf0]  ;;  %v1733_v45 = vld [vmem:[%s2649_s2 + $0x164] sm:$0xf] }
 0x1f5   :  { %v578_v53 = vadd.f32 %v1772_v46, %v574_v51  ;;  %v572_v54 = vadd.f32 %v1774_v47, %v568_v52  ;;  %v1479_v46 = vld [vmem:[%s2648_s1 + $0x100] sm:$0xf]  ;;  %v1705_v47 = vld [vmem:[%s2648_s1 + $0x104] sm:$0xf0]  ;;  %v1481_v51 = vld [vmem:[%s2648_s1 + $0x108] sm:$0xf0]  ;;  %897 = vmatpush.bf16.msra.mxu0 %v1488_v43  ;;  %v1627_v43 = vor.u32 %v1735_v28, %v1624_v36 }
 0x1f6   :  { %v1480_v52 = vor.u32 %v1705_v47, %v1479_v46  ;;  %911 = vmatpush.bf16.msra.mxu1 %v1492_v48  ;;  %v1616_v46 = vld [vmem:[%s2649_s2 + $0x168] sm:$0xf0]  ;;  %v1615_v47 = vor.u32 %v1734_v42, %v1614_v37  ;;  %v1777_v42 = vld [vmem:[%s2652_s5 + $0x2] ss:$0 sm:$0xff] }
 0x1f7   :  { %1784 = vtanh.f32 %v578_v53  ;;  %1065 = vmatpush.bf16.msra.mxu3 %v1627_v43  ;;  %v1619_v48 = vor.u32 %v1733_v45, %v1616_v46 }
 0x1f8   :  { %1786 = vtanh.f32 %v572_v54  ;;  %1052 = vmatpush.bf16.msra.mxu2 %v1615_v47 }
 0x1f9   :  { %898 = vmatpush.bf16.msra.mxu0 %v1480_v52  ;;  %v1731_v52 = vld [vmem:[%s2649_s2 + $0x154] sm:$0xf] }
 0x1fb   :  { %1066 = vmatpush.bf16.msra.mxu3 %v1619_v48 }
 0x1fd   :  { %v1785_v56 = vpop.eup %1784 }
 0x1fe   :  { %v1787_v57 = vpop.eup %1786  ;;  %v588_v58 = vmul.f32 %v1785_v56, %v1773_v55  ;;  %v1775_v56 = vld [vmem:[%s2653_s6 + $0x1] ss:$0 sm:$0xff] }
 0x1ff   :  { %v585_v59 = vmul.f32 %v1787_v57, %v1773_v55  ;;  %v1484_v55 = vor.u32 %v1704_v49, %v1481_v51  ;;  %v1606_v49 = vld [vmem:[%s2649_s2 + $0x150] sm:$0xf]  ;;  %v1732_v51 = vld [vmem:[%s2649_s2 + $0x154] sm:$0xf0] }
 0x201   :  { %v1755_v60 = vpack.c.bf16 %v588_v58, %v585_v59  ;;  %912 = vmatpush.bf16.msra.mxu1 %v1484_v55 }
 0x203   :  { %1756 = vst [vmem:[#allocation3] sm:$0xff] %v1755_v60  }
 0x20a   :  { %v1686_v61 = vld [vmem:[#allocation3] sm:$0xff] }
 0x20b   :  { %704 = vmatmul.bf16.vlgmr.msrb.gmra.mxu2 %v1686_v61  ;;  %718 = vmatmul.bf16.vlgmr.msrb.gmra.mxu3 %v1686_v61 }
 0x28e   :  { %v705_v53 = vpop.f32.mrf.mxu2  ;;  %v719_v54 = vpop.f32.mrf.mxu3 }
 0x296   :  { %v707_v57 = vpop.f32.mrf.mxu2  ;;  %v721_v58 = vpop.f32.mrf.mxu3 }
 0x297   :  { %v725_v59 = vadd.f32 %v719_v54, %v707_v57  ;;  %v724_v60 = vsub.f32 %v705_v53, %v721_v58  ;;  %v1607_v53 = vor.u32 %v1732_v51, %v1606_v49  ;;  %v1608_v54 = vld [vmem:[%s2649_s2 + $0x158] sm:$0xf0]  ;;  %v1730_v57 = vld [vmem:[%s2649_s2 + $0x144] sm:$0xf0]  ;;  %v1729_v58 = vld [vmem:[%s2649_s2 + $0x144] sm:$0xf] }
 0x298   :  { %v1611_v55 = vor.u32 %v1731_v52, %v1608_v54 }
 0x299   :  { %v731_v61 = vadd.f32 %v1775_v56, %v725_v59  ;;  %v732_v62 = vmul.f32 %v724_v60, %v2215_v33  ;;  %v737_v63 = vmul.f32 %v724_v60, %v2217_v34  ;;  %v740_v0 = vmul.f32 %v724_v60, %v2211_v31  ;;  %1053 = vmatpush.bf16.msra.mxu2 %v1607_v53  ;;  %v1598_v56 = vld [vmem:[%s2649_s2 + $0x140] sm:$0xf] }
 0x29a   :  { %v745_v1 = vmul.f32 %v724_v60, %v2213_v32  ;;  %1067 = vmatpush.bf16.msra.mxu3 %v1611_v55  ;;  %v1599_v59 = vor.u32 %v1730_v57, %v1598_v56  ;;  %v1600_v60 = vld [vmem:[%s2649_s2 + $0x148] sm:$0xf0]  ;;  %v1779_v53 = vld [vmem:[%s2653_s6 + $0x2] ss:$0 sm:$0xff] }
 0x29b   :  { %v733_v2 = vmul.f32 %v731_v61, %v2217_v34  ;;  %v736_v3 = vmul.f32 %v731_v61, %v2215_v33  ;;  %v741_v4 = vmul.f32 %v731_v61, %v2213_v32  ;;  %v744_v5 = vmul.f32 %v731_v61, %v2211_v31 }
 0x29c   :  { %v1603_v61 = vor.u32 %v1729_v58, %v1600_v60 }
 0x29d   :  { %v734_v6 = vsub.f32 %v732_v62, %v733_v2  ;;  %v738_v7 = vadd.f32 %v737_v63, %v736_v3  ;;  %v742_v8 = vsub.f32 %v740_v0, %v741_v4  ;;  %v746_v9 = vadd.f32 %v745_v1, %v744_v5  ;;  %1054 = vmatpush.bf16.msra.mxu2 %v1599_v59  ;;  %v1590_v62 = vld [vmem:[%s2649_s2 + $0x130] sm:$0xf]  ;;  %v1728_v63 = vld [vmem:[%s2649_s2 + $0x134] sm:$0xf0]  ;;  %v1727_v0 = vld [vmem:[%s2649_s2 + $0x134] sm:$0xf] }
 0x29e   :  { %1068 = vmatpush.bf16.msra.mxu3 %v1603_v61  ;;  %v1591_v1 = vor.u32 %v1728_v63, %v1590_v62  ;;  %v1592_v2 = vld [vmem:[%s2649_s2 + $0x138] sm:$0xf0]  ;;  %v1582_v4 = vld [vmem:[%s2649_s2 + $0x120] sm:$0xf]  ;;  %v1726_v5 = vld [vmem:[%s2649_s2 + $0x124] sm:$0xf0] }
 0x29f   :  { %v2468_v34 = vadd.f32 %v734_v6, %v2220_v50  ;;  %v2471_v33 = vadd.f32 %v738_v7, %v2223_v44  ;;  %v2474_v31 = vsub.f32 %v2226_v38, %v742_v8  ;;  %v2477_v32 = vsub.f32 %v2229_v40, %v746_v9  ;;  %v1725_v6 = vld [vmem:[%s2649_s2 + $0x124] sm:$0xf]  ;;  %v1584_v8 = vld [vmem:[%s2649_s2 + $0x128] sm:$0xf0] }
 0x2a0   :  { %v1595_v3 = vor.u32 %v1727_v0, %v1592_v2  ;;  %v1583_v7 = vor.u32 %v1726_v5, %v1582_v4  ;;  %v1587_v9 = vor.u32 %v1725_v6, %v1584_v8  ;;  %v1793_v5 = vld [vmem:[%s2654_s7 + $0x8] sm:$0xff] }
 0x2a1   :  { %v765_v14 = vmul.f32 %v2459_v10, %v2468_v34  ;;  %v767_v15 = vmul.f32 %v2461_v11, %v2471_v33  ;;  %v770_v16 = vmul.f32 %v2463_v12, %v2474_v31  ;;  %v772_v17 = vmul.f32 %v2465_v13, %v2477_v32  ;;  %1055 = vmatpush.bf16.msra.mxu2 %v1591_v1 }
 0x2a2   :  { %v775_v18 = vmul.f32 %v2459_v10, %v2471_v33  ;;  %v776_v19 = vmul.f32 %v2461_v11, %v2468_v34  ;;  %v778_v20 = vmul.f32 %v2463_v12, %v2477_v32  ;;  %v779_v21 = vmul.f32 %v2465_v13, %v2474_v31  ;;  %1069 = vmatpush.bf16.msra.mxu3 %v1595_v3  ;;  %v1792_v3 = vld [vmem:[%s2654_s7] sm:$0xff] }
 0x2a3   :  { %v768_v22 = vsub.f32 %v765_v14, %v767_v15  ;;  %v773_v23 = vsub.f32 %v770_v16, %v772_v17  ;;  %v1574_v14 = vld [vmem:[%s2649_s2 + $0x110] sm:$0xf]  ;;  %v1724_v15 = vld [vmem:[%s2649_s2 + $0x114] sm:$0xf0]  ;;  %v1723_v16 = vld [vmem:[%s2649_s2 + $0x114] sm:$0xf]  ;;  %v394_v4 = vadd.f32 %v1792_v3, %v2226_v38  ;;  %v397_v6 = vadd.f32 %v1793_v5, %v2229_v40 }
 0x2a4   :  { %v777_v24 = vadd.f32 %v776_v19, %v775_v18  ;;  %v780_v25 = vadd.f32 %v779_v21, %v778_v20  ;;  %v1575_v17 = vor.u32 %v1724_v15, %v1574_v14  ;;  %v1576_v18 = vld [vmem:[%s2649_s2 + $0x118] sm:$0xf0]  ;;  %v1566_v19 = vld [vmem:[%s2649_s2 + $0x100] sm:$0xf]  ;;  %v1722_v20 = vld [vmem:[%s2649_s2 + $0x104] sm:$0xf0] }
 0x2a5   :  { %v774_v26 = vadd.f32 %v773_v23, %v768_v22  ;;  %1056 = vmatpush.bf16.msra.mxu2 %v1583_v7  ;;  %v1579_v21 = vor.u32 %v1723_v16, %v1576_v18  ;;  %v1721_v22 = vld [vmem:[%s2649_s2 + $0x104] sm:$0xf]  ;;  %v1568_v23 = vld [vmem:[%s2649_s2 + $0x108] sm:$0xf0]  ;;  %v1795_v38 = vld [vmem:[%s2654_s7 + $0x18] sm:$0xff]  ;;  %v749_v14 = vadd.f32 %v2474_v31, %v394_v4  ;;  %v752_v40 = vadd.f32 %v2477_v32, %v397_v6 }
 0x2a6   :  { %v781_v27 = vadd.f32 %v780_v25, %v777_v24  ;;  %1070 = vmatpush.bf16.msra.mxu3 %v1587_v9  ;;  %v1567_v24 = vor.u32 %v1722_v20, %v1566_v19  ;;  %v1571_v25 = vor.u32 %v1721_v22, %v1568_v23  ;;  %v403_v9 = vadd.f32 %v1795_v38, %v2223_v44 }
 0x2a8   :  { %v1760_v30 = vpack.c.bf16 %v781_v27, %v774_v26  ;;  %v758_v19 = vadd.f32 %v2471_v33, %v403_v9 }
 0x2a9   :  { %1057 = vmatpush.bf16.msra.mxu2 %v1575_v17 }
 0x2aa   :  { %1761 = vst [vmem:[#allocation2] sm:$0xff] %v1760_v30   ;;  %1071 = vmatpush.bf16.msra.mxu3 %v1579_v21  ;;  %v1776_v30 = vld [vmem:[%s2651_s4 + $0x2] ss:$0 sm:$0xff] }
 0x2ad   :  { %1058 = vmatpush.bf16.msra.mxu2 %v1567_v24 }
 0x2ae   :  { %1072 = vmatpush.bf16.msra.mxu3 %v1571_v25 }
 0x2b1   :  { %v1703_v35 = vld [vmem:[#allocation2] sm:$0xff] }
 0x2b2   :  { %899 = vmatmul.bf16.vlgmr.msra.gmra.mxu0 %v1703_v35  ;;  %913 = vmatmul.bf16.vlgmr.msra.gmra.mxu1 %v1703_v35  ;;  %v1778_v35 = vld [vmem:[%s2650_s3 + $0x2] ss:$0 sm:$0xff] }
 0x32f   :  { %v900_v26 = vpop.f32.mrf.mxu0  ;;  %v914_v27 = vpop.f32.mrf.mxu1 }
 0x337   :  { %v902_v39 = vpop.f32.mrf.mxu0  ;;  %v916_v41 = vpop.f32.mrf.mxu1 }
 0x338   :  { %v929_v28 = vadd.f32 %v914_v27, %v902_v39  ;;  %v923_v29 = vsub.f32 %v900_v26, %v916_v41 }
 0x33a   :  { %v933_v36 = vadd.f32 %v1776_v30, %v929_v28  ;;  %v927_v37 = vadd.f32 %v1778_v35, %v923_v29 }
 0x33c   :  { %1788 = vtanh.f32 %v933_v36 }
 0x33d   :  { %1790 = vtanh.f32 %v927_v37 }
 0x342   :  { %v1789_v43 = vpop.eup %1788 }
 0x343   :  { %v1791_v45 = vpop.eup %1790  ;;  %v943_v46 = vmul.f32 %v1789_v43, %v1777_v42 }
 0x344   :  { %v940_v47 = vmul.f32 %v1791_v45, %v1777_v42 }
 0x346   :  { %v1765_v48 = vpack.c.bf16 %v943_v46, %v940_v47 }
 0x348   :  { %1766 = vst [vmem:[#allocation3] sm:$0xff] %v1765_v48  }
 0x34f   :  { %v1720_v49 = vld [vmem:[#allocation3] sm:$0xff] }
 0x350   :  { %1059 = vmatmul.bf16.vlgmr.msra.gmra.mxu2 %v1720_v49  ;;  %1073 = vmatmul.bf16.vlgmr.msra.gmra.mxu3 %v1720_v49 }
 0x3d3   :  { %v1060_v51 = vpop.f32.mrf.mxu2  ;;  %v1074_v52 = vpop.f32.mrf.mxu3 }
 0x3db   :  { %v1062_v54 = vpop.f32.mrf.mxu2  ;;  %v1076_v55 = vpop.f32.mrf.mxu3 }
 0x3dc   :  { %v1080_v56 = vadd.f32 %v1074_v52, %v1062_v54  ;;  %v1079_v57 = vsub.f32 %v1060_v51, %v1076_v55 }
 0x3de   :  { %v1086_v58 = vadd.f32 %v1779_v53, %v1080_v56  ;;  %v1087_v59 = vmul.f32 %v1079_v57, %v2463_v12  ;;  %v1092_v60 = vmul.f32 %v1079_v57, %v2465_v13  ;;  %v1095_v61 = vmul.f32 %v1079_v57, %v2459_v10 }
 0x3df   :  { %v1100_v62 = vmul.f32 %v1079_v57, %v2461_v11 }
 0x3e0   :  { %v1088_v63 = vmul.f32 %v1086_v58, %v2465_v13  ;;  %v1091_v0 = vmul.f32 %v1086_v58, %v2463_v12  ;;  %v1096_v1 = vmul.f32 %v1086_v58, %v2461_v11  ;;  %v1099_v2 = vmul.f32 %v1086_v58, %v2459_v10  ;;  %v1794_v12 = vld [vmem:[%s2654_s7 + $0x10] sm:$0xff] }
 0x3e1   :  { %v400_v11 = vadd.f32 %v1794_v12, %v2220_v50 }
 0x3e2   :  { %v1089_v13 = vsub.f32 %v1087_v59, %v1088_v63  ;;  %v1093_v10 = vadd.f32 %v1092_v60, %v1091_v0  ;;  %v1097_v7 = vsub.f32 %v1095_v61, %v1096_v1  ;;  %v1101_v8 = vadd.f32 %v1100_v62, %v1099_v2 }
 0x3e3   :  { %v755_v15 = vadd.f32 %v2468_v34, %v400_v11 }
 0x3e4   :  { %v1090_v16 = vadd.f32 %v1089_v13, %v2468_v34  ;;  %v1094_v50 = vadd.f32 %v1093_v10, %v2471_v33  ;;  %v1098_v17 = vsub.f32 %v2474_v31, %v1097_v7  ;;  %v1102_v18 = vsub.f32 %v2477_v32, %v1101_v8 }
 0x3e6   :  { %v1104_v20 = vadd.f32 %v1098_v17, %v749_v14  ;;  %v1107_v21 = vadd.f32 %v1102_v18, %v752_v40  ;;  %v1110_v22 = vadd.f32 %v1090_v16, %v755_v15  ;;  %v1113_v44 = vadd.f32 %v1094_v50, %v758_v19 }
 0x3e8   :  { %1105 = vst [vmem:[%s2655_s8] sm:$0xff] %v1104_v20 }
 0x3e9   :  { %1630 = vst [vmem:[%s2655_s8 + $0x8] sm:$0xff] %v1107_v21 }
 0x3ea   :  { %1632 = vst [vmem:[%s2655_s8 + $0x10] sm:$0xff] %v1110_v22 }
 0x3eb   :  { %1634 = vst [vmem:[%s2655_s8 + $0x18] sm:$0xff] %v1113_v44 }
 0x3ec   :  { %1119 = vsyncpa [#allocation5], 1 }

</bundles_post_ra>
